<compile_context>
chip_gen: v7x
topology: tpu7x:2x2x1
jax: 0.10.0
libtpu: 0.0.40
codegen_flags: <defaults>
</compile_context>

<pallas_src>
import jax
import jax.numpy as jnp
from jax.experimental import pallas as pl
from jax.experimental.pallas import tpu as pltpu

EPS = 1e-5


def _bn_add_relu_kernel(x_ref, res_ref, gamma_ref, beta_ref, o_ref):
    # x_ref, res_ref, o_ref: (block_c, NHW);  gamma_ref, beta_ref: (block_c, 1)
    x = x_ref[...]
    inv_n = 1.0 / x.shape[1]

    # Per-channel batch statistics (training-mode BN, biased variance).
    # Two-pass form: mean first, then sum of squared deviations, so there is
    # no E[x^2] - mean^2 cancellation.  xc is reused in the epilogue.
    mean = jnp.sum(x, axis=1, keepdims=True) * inv_n
    xc = x - mean
    var = jnp.sum(xc * xc, axis=1, keepdims=True) * inv_n
    inv_std = jax.lax.rsqrt(var + EPS)          # EUP rsqrt, one per channel

    # out = max(res + (x - mean) * (gamma * inv_std) + beta, 0)
    scale = gamma_ref[...] * inv_std            # (block_c, 1), hoisted off the
    y = res_ref[...] + xc * scale + beta_ref[...]   # per-element path
    o_ref[...] = jnp.maximum(y, 0.0).astype(o_ref.dtype)


def _tensorcores_per_device() -> int:
    """Best-effort TensorCore count of one JAX device (used only for grid sizing)."""
    try:
        kind = jax.devices()[0].device_kind.lower()
    except Exception:
        return 1
    # v2/v3 (one TC per device), v5e / v6e ("lite" chips) have a single
    # TensorCore per device; v4 / v5p megacore and v7x expose two.
    if any(tag in kind for tag in ("v2", "v3", "lite", "v5e", "v6e")):
        return 1
    return 2


@jax.jit
def bn_add_relu(x440, x427, gamma, beta):
    """x440, x427: NCHW float32; gamma, beta: (C,) float32.

    Computes ReLU(x427 + BatchNorm2d(x440)) with batch statistics (training
    mode), matching the PyTorch module's forward output.
    """
    # TODO(synk): training-mode BatchNorm2d also updates running_mean /
    #             running_var; only the forward output is reproduced here.
    N, C, H, W = x440.shape
    nhw = N * H * W

    # (N, C, H, W) -> (C, N*H*W).  For N == 1 this only moves a size-1 axis, so
    # XLA lowers it to a free reshape of the contiguous NCHW buffer (no extra
    # HBM pass).  For N > 1 it becomes a real transpose (still correct).
    x2d = jnp.transpose(x440, (1, 0, 2, 3)).reshape(C, nhw).astype(jnp.float32)
    r2d = jnp.transpose(x427, (1, 0, 2, 3)).reshape(C, nhw).astype(jnp.float32)
    g2d = gamma.reshape(C, 1).astype(jnp.float32)
    b2d = beta.reshape(C, 1).astype(jnp.float32)

    # One channel block per TensorCore: grid=(1,) on v5e/v6e, grid=(2,)
    # "parallel" on dual-TC chips.  Blocks stay a multiple of 8 channels and
    # the NHW axis is never split, so each block is one contiguous HBM DMA.
    n_blocks = max(1, min(_tensorcores_per_device(), C // 8))
    block_c = min(C, ((pl.cdiv(C, n_blocks) + 7) // 8) * 8)
    grid = (pl.cdiv(C, block_c),)

    # Advisory cost so XLA schedules this small custom call sensibly.
    cost = pl.CostEstimate(
        flops=9 * C * nhw,                       # stats + center + epilogue
        transcendentals=C,                       # one rsqrt per channel
        bytes_accessed=(3 * C * nhw + 2 * C) * 4,
    )

    out2d = pl.pallas_call(
        _bn_add_relu_kernel,
        out_shape=jax.ShapeDtypeStruct((C, nhw), jnp.float32),
        grid=grid,
        in_specs=[
            pl.BlockSpec((block_c, nhw), lambda i: (i, 0)),
            pl.BlockSpec((block_c, nhw), lambda i: (i, 0)),
            pl.BlockSpec((block_c, 1), lambda i: (i, 0)),
            pl.BlockSpec((block_c, 1), lambda i: (i, 0)),
        ],
        out_specs=pl.BlockSpec((block_c, nhw), lambda i: (i, 0)),
        compiler_params=pltpu.CompilerParams(
            dimension_semantics=("parallel",)),
        cost_estimate=cost,
    )(x2d, r2d, g2d, b2d)

    # TODO(synk): if the downstream consumer accepts bf16, emit the output as
    #             bf16 and donate one f32 input via input_output_aliases to cut
    #             output bytes; kept f32 here to match the module's dtype.
    # (C, N*H*W) -> (N, C, H, W); free for N == 1.
    return jnp.transpose(out2d.reshape(C, N, H, W), (1, 0, 2, 3))


def reference(x440, x427, gamma, beta):
    # Pure-JAX reference (training-mode BN) for the sanity check.
    mean = jnp.mean(x440, axis=(0, 2, 3), keepdims=True)
    var = jnp.mean((x440 - mean) ** 2, axis=(0, 2, 3), keepdims=True)
    y = (x440 - mean) * jax.lax.rsqrt(var + EPS)
    y = y * gamma.reshape(1, -1, 1, 1) + beta.reshape(1, -1, 1, 1)
    return jnp.maximum(x427 + y, 0.0)


if __name__ == "__main__":
    key = jax.random.PRNGKey(0)
    k1, k2, k3, k4 = jax.random.split(key, 4)

    N, C, H, W = 1, 888, 7, 7        # shapes from the PyTorch module
    x440 = jax.random.normal(k1, (N, C, H, W), dtype=jnp.float32)
    x427 = jax.random.normal(k2, (N, C, H, W), dtype=jnp.float32)
    # PyTorch default affine init is gamma=1, beta=0; perturb so the affine
    # path is exercised non-trivially.
    gamma = 1.0 + 0.1 * jax.random.normal(k3, (C,), dtype=jnp.float32)
    beta = 0.1 * jax.random.normal(k4, (C,), dtype=jnp.float32)

    out = jax.block_until_ready(bn_add_relu(x440, x427, gamma, beta))
    ref = reference(x440, x427, gamma, beta)

    assert out.shape == (N, C, H, W)
    assert bool(jnp.max(jnp.abs(out - ref)) < 5e-4), "mismatch vs reference"

    print("KERNEL_OK")
</pallas_src>

<mosaic_0001>
module attributes {stable_mosaic.version = 11 : i64} {
  func.func @_bn_add_relu_kernel(%arg0: i32, %arg1: memref<448x49xf32, #tpu.memory_space<vmem>>, %arg2: memref<448x49xf32, #tpu.memory_space<vmem>>, %arg3: memref<448x1xf32, #tpu.memory_space<vmem>>, %arg4: memref<448x1xf32, #tpu.memory_space<vmem>>, %arg5: memref<448x49xf32, #tpu.memory_space<vmem>>) attributes {dimension_semantics = [#tpu.dimension_semantics<parallel>], iteration_bounds = array<i64: 2>, scalar_prefetch = 0 : i64, scratch_operands = 0 : i64, tpu.core_type = #tpu.core_type<tc>, window_params = [{transform_indices = @transform_0, window_bounds = array<i64: 448, 49>}, {transform_indices = @transform_1, window_bounds = array<i64: 448, 49>}, {transform_indices = @transform_2, window_bounds = array<i64: 448, 1>}, {transform_indices = @transform_3, window_bounds = array<i64: 448, 1>}, {transform_indices = @transform_4, window_bounds = array<i64: 448, 49>}]} {
    %c0 = arith.constant 0 : index
    %c0_0 = arith.constant 0 : index
    %0 = vector.load %arg1[%c0, %c0_0] : memref<448x49xf32, #tpu.memory_space<vmem>>, vector<448x49xf32>
    %cst = arith.constant dense<0.000000e+00> : vector<448xf32>
    %1 = vector.multi_reduction <add>, %0, %cst [1] : vector<448x49xf32> to vector<448xf32>
    %2 = vector.shape_cast %1 : vector<448xf32> to vector<448x1xf32>
    %cst_1 = arith.constant 0.0204081628 : f32
    %3 = vector.broadcast %cst_1 : f32 to vector<448x1xf32>
    %4 = arith.mulf %2, %3 : vector<448x1xf32>
    %5 = vector.broadcast %4 : vector<448x1xf32> to vector<448x49xf32>
    %6 = arith.subf %0, %5 : vector<448x49xf32>
    %7 = arith.mulf %6, %6 : vector<448x49xf32>
    %cst_2 = arith.constant dense<0.000000e+00> : vector<448xf32>
    %8 = vector.multi_reduction <add>, %7, %cst_2 [1] : vector<448x49xf32> to vector<448xf32>
    %9 = vector.shape_cast %8 : vector<448xf32> to vector<448x1xf32>
    %cst_3 = arith.constant 0.0204081628 : f32
    %10 = vector.broadcast %cst_3 : f32 to vector<448x1xf32>
    %11 = arith.mulf %9, %10 : vector<448x1xf32>
    %cst_4 = arith.constant 9.99999974E-6 : f32
    %12 = vector.broadcast %cst_4 : f32 to vector<448x1xf32>
    %13 = arith.addf %11, %12 : vector<448x1xf32>
    %14 = math.rsqrt %13 : vector<448x1xf32>
    %c0_5 = arith.constant 0 : index
    %c0_6 = arith.constant 0 : index
    %15 = vector.load %arg3[%c0_5, %c0_6] : memref<448x1xf32, #tpu.memory_space<vmem>>, vector<448x1xf32>
    %16 = arith.mulf %15, %14 : vector<448x1xf32>
    %c0_7 = arith.constant 0 : index
    %c0_8 = arith.constant 0 : index
    %17 = vector.load %arg2[%c0_7, %c0_8] : memref<448x49xf32, #tpu.memory_space<vmem>>, vector<448x49xf32>
    %18 = vector.broadcast %16 : vector<448x1xf32> to vector<448x49xf32>
    %19 = arith.mulf %6, %18 : vector<448x49xf32>
    %20 = arith.addf %17, %19 : vector<448x49xf32>
    %c0_9 = arith.constant 0 : index
    %c0_10 = arith.constant 0 : index
    %21 = vector.load %arg4[%c0_9, %c0_10] : memref<448x1xf32, #tpu.memory_space<vmem>>, vector<448x1xf32>
    %22 = vector.broadcast %21 : vector<448x1xf32> to vector<448x49xf32>
    %23 = arith.addf %20, %22 : vector<448x49xf32>
    %cst_11 = arith.constant 0.000000e+00 : f32
    %24 = vector.broadcast %cst_11 : f32 to vector<448x49xf32>
    %25 = arith.maximumf %23, %24 : vector<448x49xf32>
    %c0_12 = arith.constant 0 : index
    %c0_13 = arith.constant 0 : index
    %26 = vector.load %arg5[%c0_12, %c0_13] : memref<448x49xf32, #tpu.memory_space<vmem>>, vector<448x49xf32>
    tpu.vector_store %arg5[%c0_12, %c0_13], %25 {strides = array<i32>} : memref<448x49xf32, #tpu.memory_space<vmem>>, vector<448x49xf32>,
    return
  }
  func.func @transform_0(%arg0: i32) -> (i32, i32) {
    %c0_i32 = arith.constant 0 : i32
    %c0_i32_0 = arith.constant 0 : i32
    return %arg0, %c0_i32 : i32, i32
  }
  func.func @transform_1(%arg0: i32) -> (i32, i32) {
    %c0_i32 = arith.constant 0 : i32
    %c0_i32_0 = arith.constant 0 : i32
    return %arg0, %c0_i32 : i32, i32
  }
  func.func @transform_2(%arg0: i32) -> (i32, i32) {
    %c0_i32 = arith.constant 0 : i32
    %c0_i32_0 = arith.constant 0 : i32
    return %arg0, %c0_i32 : i32, i32
  }
  func.func @transform_3(%arg0: i32) -> (i32, i32) {
    %c0_i32 = arith.constant 0 : i32
    %c0_i32_0 = arith.constant 0 : i32
    return %arg0, %c0_i32 : i32, i32
  }
  func.func @transform_4(%arg0: i32) -> (i32, i32) {
    %c0_i32 = arith.constant 0 : i32
    %c0_i32_0 = arith.constant 0 : i32
    return %arg0, %c0_i32 : i32, i32
  }
}

</mosaic_0001>

<bundles_post_ra>
// kernel: bn_add_relu.1
= control target key start
LH: loop header
LB: loop body
LE: loop exit
PB: predicated region body
PF: predicated region fallthrough
CT: control target
= control target key end

     0   :  { %s2955_s15 = smov 0   ;;  %s2957_s16 = smov 0   ;;  %s4323_s0 = inlined_call_operand.vmem [shape: f32[888,49], index: 0, kind: input, shape index: {}]   ;;  %s4324_s1 = inlined_call_operand.vmem [shape: f32[888,49], index: 1, kind: input, shape index: {}]   ;;  %s4325_s2 = inlined_call_operand.vmem [shape: f32[888,1], index: 2, kind: input, shape index: {}]   ;;  %s4326_s3 = inlined_call_operand.vmem [shape: f32[888,1], index: 3, kind: input, shape index: {}]   ;;  %s4327_s4 = inlined_call_operand.vmem [shape: f32[888,49], index: 4, kind: output, shape index: {}]  }
   0x1   :  { %s2959_s17 = smov 0  }
   0x2 LB: > { %s2968_s18 = sadd.s32 4294967295, %s2895_s17   ;;  %s2970_s19 = sadd.s32 1, %s2895_s17   ;;  %s2895_s17 = sphi %s2959_s17, %s4496_s17   ;;  %s2891_s16 = sphi %s2957_s16, %s4495_s16   ;;  %s2887_s15 = sphi %s2955_s15, %s4494_s15  }
   0x3   : > { %s122_s20 = ssub.s32 %s2895_s17, %s2970_s19  ;;  %s125_s21 = sadd.s32 1, %s2891_s16 }
   0x4   : > { %p123_p0 = scmp.eq.s32.totalorder %s122_s20, 0  ;;  %p135_p1 = scmp.ne.s32.totalorder %s2891_s16, %s2887_s15 }
   0x5   : > { %p136_p2 = scmp.eq.s32.totalorder %s2968_s18, 1  ;;  %p2614_p3 = scmp.ge.s32.totalorder %s2895_s17, 1 }
   0x6   : > { %s2978_s22 = scalar_select %p123_p0, %s2891_s16, %s125_s21  }
   0x7   : > { %p2980_p4 = por %p136_p2, %p135_p1  ;;  %p228_p5 = scmp.lt.s32.totalorder %s2895_s17, 3 }
   0x9   : > { %p229_p6 = pnand %p2614_p3, %p228_p5 }
   0xb   : > { %232 = sbr.rel (%p229_p6) target bundleno = 785 (0x311), region = 36 }
  0x12   : > { %s2985_s24 = smul.u32 56, %s2968_s18  ;;  %vm401_vm0 = vcmask 400384   ;;  %s281_s13 = sand.u32 1, %s2887_s15  }
  0x13   : > { %s2632_s14 = smul.u32 448, %s281_s13 }
  0x14   : > { %p289_p7 = scmp.lt.s32.totalorder %s2985_s24, 110  ;;  %s2146_s17 = ssub.s32 (%p2980_p4), 111, %s2985_s24 }
  0x15   : > { %s3863_s15 = scalar_lea.vmem [#allocation2], %s2632_s14   ;;  %s2631_s20 = smul.u32 (%p2980_p4), 448, %s2968_s18 }
  0x16   : > { %s290_s25 = scalar_select %p289_p7, %s2985_s24, 110 }
  0x17   : > { %p2147_p8 = scmp.lt.s32.totalorder (%p2980_p4), %s2146_s17, 56 }
  0x18   : > { %s2989_s26 = sshll.u32 %s290_s25, 3 }
  0x19   : > { %s2995_s29 = scalar_lea.vmem %s4323_s0, %s2989_s26  ;;  %s3617_s6 = scalar_lea.vmem %s4325_s2, %s2989_s26 }
  0x1a   : > { %v2998_v0 = vld [vmem:[%s2995_s29] sm:$0xff]  ;;  %v3001_v1 = vld [vmem:[%s2995_s29 + $0x10] sm:$0xff]  ;;  %v3004_v2 = vld [vmem:[%s2995_s29 + $0x8] sm:$0xff]  ;;  %s3677_s9 = scalar_lea.vmem %s4326_s3, %s2989_s26  ;;  %s3845_s12 = scalar_lea.vmem %s4324_s1, %s2989_s26 }
  0x1b   : > { %v402_v3 = vsel %vm401_vm0, %v2998_v0, 0.0  ;;  %v408_v4 = vsel %vm401_vm0, %v3001_v1, 0.0  ;;  %v3011_v5 = vld [vmem:[%s2995_s29 + $0x18] sm:$0xff]  ;;  %v405_v6 = vsel %vm401_vm0, %v3004_v2, 0.0  ;;  %v3018_v8 = vld [vmem:[%s2995_s29 + $0x28] sm:$0xff]  ;;  %v3021_v9 = vld [vmem:[%s2995_s29 + $0x20] sm:$0xff]  ;;  %s4145_s26 = scalar_lea.vmem (%p2980_p4), %s4327_s4, %s2631_s20  }
  0x1c   : > { %403 = vadd.xlane.f32.xlu0 %v402_v3  ;;  %409 = vadd.xlane.f32.xlu1 %v408_v4  ;;  %v411_v7 = vsel %vm401_vm0, %v3011_v5, 0.0  ;;  %v417_v10 = vsel %vm401_vm0, %v3018_v8, 0.0  ;;  %v414_v11 = vsel %vm401_vm0, %v3021_v9, 0.0  ;;  %v3028_v12 = vld [vmem:[%s2995_s29 + $0x38] sm:$0xff]  ;;  %v3031_v13 = vld [vmem:[%s2995_s29 + $0x30] sm:$0xff]  ;;  %v3038_v16 = vld [vmem:[%s2995_s29 + $0x48] sm:$0xff] }
  0x1d   : > { %v423_v14 = vsel %vm401_vm0, %v3028_v12, 0.0  ;;  %v420_v15 = vsel %vm401_vm0, %v3031_v13, 0.0  ;;  %v3041_v17 = vld [vmem:[%s2995_s29 + $0x40] sm:$0xff]  ;;  %v429_v18 = vsel %vm401_vm0, %v3038_v16, 0.0  ;;  %v3048_v20 = vld [vmem:[%s2995_s29 + $0x58] sm:$0xff]  ;;  %v3051_v21 = vld [vmem:[%s2995_s29 + $0x50] sm:$0xff] }
  0x1e   : > { %v426_v19 = vsel %vm401_vm0, %v3041_v17, 0.0  ;;  %v435_v22 = vsel %vm401_vm0, %v3048_v20, 0.0  ;;  %v432_v23 = vsel %vm401_vm0, %v3051_v21, 0.0  ;;  %v3058_v24 = vld [vmem:[%s2995_s29 + $0x68] sm:$0xff]  ;;  %v3061_v25 = vld [vmem:[%s2995_s29 + $0x60] sm:$0xff]  ;;  %v3068_v28 = vld [vmem:[%s2995_s29 + $0x78] sm:$0xff] }
  0x1f   : > { %v441_v26 = vsel %vm401_vm0, %v3058_v24, 0.0  ;;  %v438_v27 = vsel %vm401_vm0, %v3061_v25, 0.0  ;;  %v3071_v29 = vld [vmem:[%s2995_s29 + $0x70] sm:$0xff]  ;;  %v447_v30 = vsel %vm401_vm0, %v3068_v28, 0.0  ;;  %v3078_v32 = vld [vmem:[%s2995_s29 + $0x88] sm:$0xff]  ;;  %v3081_v33 = vld [vmem:[%s2995_s29 + $0x80] sm:$0xff] }
  0x20   : > { %406 = vadd.xlane.f32.xlu0 %v405_v6  ;;  %412 = vadd.xlane.f32.xlu1 %v411_v7  ;;  %v444_v31 = vsel %vm401_vm0, %v3071_v29, 0.0  ;;  %v453_v34 = vsel %vm401_vm0, %v3078_v32, 0.0  ;;  %v450_v35 = vsel %vm401_vm0, %v3081_v33, 0.0  ;;  %v3088_v36 = vld [vmem:[%s2995_s29 + $0x98] sm:$0xff]  ;;  %v3091_v37 = vld [vmem:[%s2995_s29 + $0x90] sm:$0xff]  ;;  %v3098_v40 = vld [vmem:[%s2995_s29 + $0xa8] sm:$0xff] }
  0x21   : > { %v459_v38 = vsel %vm401_vm0, %v3088_v36, 0.0  ;;  %v456_v39 = vsel %vm401_vm0, %v3091_v37, 0.0  ;;  %v3101_v41 = vld [vmem:[%s2995_s29 + $0xa0] sm:$0xff]  ;;  %v465_v42 = vsel %vm401_vm0, %v3098_v40, 0.0  ;;  %v3108_v44 = vld [vmem:[%s2995_s29 + $0xb8] sm:$0xff]  ;;  %v3111_v45 = vld [vmem:[%s2995_s29 + $0xb0] sm:$0xff] }
  0x22   : > { %v462_v43 = vsel %vm401_vm0, %v3101_v41, 0.0  ;;  %v471_v46 = vsel %vm401_vm0, %v3108_v44, 0.0  ;;  %v468_v47 = vsel %vm401_vm0, %v3111_v45, 0.0  ;;  %v3118_v48 = vld [vmem:[%s2995_s29 + $0xc8] sm:$0xff]  ;;  %v3121_v49 = vld [vmem:[%s2995_s29 + $0xc0] sm:$0xff]  ;;  %v3128_v52 = vld [vmem:[%s2995_s29 + $0xd8] sm:$0xff] }
  0x23   : > { %v477_v50 = vsel %vm401_vm0, %v3118_v48, 0.0  ;;  %v474_v51 = vsel %vm401_vm0, %v3121_v49, 0.0  ;;  %v3131_v53 = vld [vmem:[%s2995_s29 + $0xd0] sm:$0xff]  ;;  %v483_v54 = vsel %vm401_vm0, %v3128_v52, 0.0  ;;  %v3138_v56 = vld [vmem:[%s2995_s29 + $0xe8] sm:$0xff]  ;;  %v3141_v57 = vld [vmem:[%s2995_s29 + $0xe0] sm:$0xff] }
  0x24   : > { %418 = vadd.xlane.f32.xlu1 %v417_v10  ;;  %415 = vadd.xlane.f32.xlu0 %v414_v11  ;;  %v480_v55 = vsel %vm401_vm0, %v3131_v53, 0.0  ;;  %v489_v58 = vsel %vm401_vm0, %v3138_v56, 0.0  ;;  %v486_v59 = vsel %vm401_vm0, %v3141_v57, 0.0  ;;  %v3148_v60 = vld [vmem:[%s2995_s29 + $0xf8] sm:$0xff]  ;;  %v3151_v61 = vld [vmem:[%s2995_s29 + $0xf0] sm:$0xff]  ;;  %v3158_v3 = vld [vmem:[%s2995_s29 + $0x108] sm:$0xff] }
  0x25   : > { %v495_v62 = vsel %vm401_vm0, %v3148_v60, 0.0  ;;  %v492_v63 = vsel %vm401_vm0, %v3151_v61, 0.0  ;;  %v3161_v4 = vld [vmem:[%s2995_s29 + $0x100] sm:$0xff]  ;;  %v501_v6 = vsel %vm401_vm0, %v3158_v3, 0.0  ;;  %v3168_v10 = vld [vmem:[%s2995_s29 + $0x118] sm:$0xff]  ;;  %v3171_v11 = vld [vmem:[%s2995_s29 + $0x110] sm:$0xff] }
  0x26   : > { %v498_v7 = vsel %vm401_vm0, %v3161_v4, 0.0 }
  0x28   : > { %424 = vadd.xlane.f32.xlu1 %v423_v14  ;;  %421 = vadd.xlane.f32.xlu0 %v420_v15  ;;  %v507_v14 = vsel %vm401_vm0, %v3168_v10, 0.0  ;;  %v504_v15 = vsel %vm401_vm0, %v3171_v11, 0.0 }
  0x2c   : > { %430 = vadd.xlane.f32.xlu1 %v429_v18  ;;  %427 = vadd.xlane.f32.xlu0 %v426_v19  ;;  %v3178_v18 = vld [vmem:[%s2995_s29 + $0x128] sm:$0xff]  ;;  %v3181_v19 = vld [vmem:[%s2995_s29 + $0x120] sm:$0xff] }
  0x30   : > { %436 = vadd.xlane.f32.xlu1 %v435_v22  ;;  %433 = vadd.xlane.f32.xlu0 %v432_v23  ;;  %v513_v22 = vsel %vm401_vm0, %v3178_v18, 0.0  ;;  %v510_v23 = vsel %vm401_vm0, %v3181_v19, 0.0 }
  0x34   : > { %442 = vadd.xlane.f32.xlu1 %v441_v26  ;;  %439 = vadd.xlane.f32.xlu0 %v438_v27  ;;  %v3188_v26 = vld [vmem:[%s2995_s29 + $0x138] sm:$0xff]  ;;  %v3191_v27 = vld [vmem:[%s2995_s29 + $0x130] sm:$0xff] }
  0x38   : > { %448 = vadd.xlane.f32.xlu1 %v447_v30  ;;  %445 = vadd.xlane.f32.xlu0 %v444_v31  ;;  %v519_v30 = vsel %vm401_vm0, %v3188_v26, 0.0  ;;  %v516_v31 = vsel %vm401_vm0, %v3191_v27, 0.0 }
  0x3c   : > { %454 = vadd.xlane.f32.xlu1 %v453_v34  ;;  %451 = vadd.xlane.f32.xlu0 %v450_v35  ;;  %v3198_v34 = vld [vmem:[%s2995_s29 + $0x148] sm:$0xff]  ;;  %v3201_v35 = vld [vmem:[%s2995_s29 + $0x140] sm:$0xff] }
  0x40   : > { %460 = vadd.xlane.f32.xlu1 %v459_v38  ;;  %457 = vadd.xlane.f32.xlu0 %v456_v39  ;;  %v525_v38 = vsel %vm401_vm0, %v3198_v34, 0.0  ;;  %v522_v39 = vsel %vm401_vm0, %v3201_v35, 0.0 }
  0x44   : > { %466 = vadd.xlane.f32.xlu1 %v465_v42  ;;  %463 = vadd.xlane.f32.xlu0 %v462_v43  ;;  %v3208_v42 = vld [vmem:[%s2995_s29 + $0x158] sm:$0xff]  ;;  %v3211_v43 = vld [vmem:[%s2995_s29 + $0x150] sm:$0xff] }
  0x48   : > { %472 = vadd.xlane.f32.xlu1 %v471_v46  ;;  %469 = vadd.xlane.f32.xlu0 %v468_v47  ;;  %v531_v46 = vsel %vm401_vm0, %v3208_v42, 0.0  ;;  %v528_v47 = vsel %vm401_vm0, %v3211_v43, 0.0 }
  0x4c   : > { %478 = vadd.xlane.f32.xlu1 %v477_v50  ;;  %475 = vadd.xlane.f32.xlu0 %v474_v51  ;;  %v3218_v50 = vld [vmem:[%s2995_s29 + $0x168] sm:$0xff]  ;;  %v3221_v51 = vld [vmem:[%s2995_s29 + $0x160] sm:$0xff] }
  0x50   : > { %484 = vadd.xlane.f32.xlu1 %v483_v54  ;;  %481 = vadd.xlane.f32.xlu0 %v480_v55  ;;  %v537_v54 = vsel %vm401_vm0, %v3218_v50, 0.0  ;;  %v534_v55 = vsel %vm401_vm0, %v3221_v51, 0.0 }
  0x54   : > { %490 = vadd.xlane.f32.xlu1 %v489_v58  ;;  %487 = vadd.xlane.f32.xlu0 %v486_v59  ;;  %v3228_v58 = vld [vmem:[%s2995_s29 + $0x178] sm:$0xff]  ;;  %v3231_v59 = vld [vmem:[%s2995_s29 + $0x170] sm:$0xff] }
  0x58   : > { %496 = vadd.xlane.f32.xlu1 %v495_v62  ;;  %493 = vadd.xlane.f32.xlu0 %v492_v63  ;;  %v543_v62 = vsel %vm401_vm0, %v3228_v58, 0.0  ;;  %v540_v63 = vsel %vm401_vm0, %v3231_v59, 0.0 }
  0x5c   : > { %502 = vadd.xlane.f32.xlu1 %v501_v6  ;;  %499 = vadd.xlane.f32.xlu0 %v498_v7  ;;  %v3238_v6 = vld [vmem:[%s2995_s29 + $0x188] sm:$0xff]  ;;  %v3241_v7 = vld [vmem:[%s2995_s29 + $0x180] sm:$0xff] }
  0x60   : > { %508 = vadd.xlane.f32.xlu1 %v507_v14  ;;  %505 = vadd.xlane.f32.xlu0 %v504_v15  ;;  %v549_v14 = vsel %vm401_vm0, %v3238_v6, 0.0  ;;  %v546_v15 = vsel %vm401_vm0, %v3241_v7, 0.0 }
  0x64   : > { %514 = vadd.xlane.f32.xlu1 %v513_v22  ;;  %511 = vadd.xlane.f32.xlu0 %v510_v23  ;;  %v3248_v22 = vld [vmem:[%s2995_s29 + $0x198] sm:$0xff]  ;;  %v3251_v23 = vld [vmem:[%s2995_s29 + $0x190] sm:$0xff] }
  0x65   : > { %4365 = vst [vmem:[#allocation3_spill] sm:$0xff] %v3248_v22  ;;  %4366 = vst [vmem:[#allocation4_spill] sm:$0xff] %v3251_v23 }
  0x68   : > { %520 = vadd.xlane.f32.xlu1 %v519_v30  ;;  %517 = vadd.xlane.f32.xlu0 %v516_v31  ;;  %v555_v30 = vsel %vm401_vm0, %v3248_v22, 0.0  ;;  %v552_v31 = vsel %vm401_vm0, %v3251_v23, 0.0 }
  0x6c   : > { %526 = vadd.xlane.f32.xlu1 %v525_v38  ;;  %523 = vadd.xlane.f32.xlu0 %v522_v39  ;;  %v3258_v38 = vld [vmem:[%s2995_s29 + $0x1a8] sm:$0xff]  ;;  %v3261_v39 = vld [vmem:[%s2995_s29 + $0x1a0] sm:$0xff] }
  0x6d   : > { %4367 = vst [vmem:[#allocation5_spill] sm:$0xff] %v3258_v38  ;;  %4368 = vst [vmem:[#allocation6_spill] sm:$0xff] %v3261_v39 }
  0x70   : > { %532 = vadd.xlane.f32.xlu1 %v531_v46  ;;  %529 = vadd.xlane.f32.xlu0 %v528_v47  ;;  %v561_v46 = vsel %vm401_vm0, %v3258_v38, 0.0  ;;  %v558_v47 = vsel %vm401_vm0, %v3261_v39, 0.0 }
  0x74   : > { %538 = vadd.xlane.f32.xlu1 %v537_v54  ;;  %535 = vadd.xlane.f32.xlu0 %v534_v55  ;;  %v3268_v54 = vld [vmem:[%s2995_s29 + $0x1b8] sm:$0xff]  ;;  %v3271_v55 = vld [vmem:[%s2995_s29 + $0x1b0] sm:$0xff] }
  0x75   : > { %4369 = vst [vmem:[#allocation7_spill] sm:$0xff] %v3268_v54 }
  0x78   : > { %544 = vadd.xlane.f32.xlu1 %v543_v62  ;;  %541 = vadd.xlane.f32.xlu0 %v540_v63  ;;  %v567_v62 = vsel %vm401_vm0, %v3268_v54, 0.0  ;;  %v564_v63 = vsel %vm401_vm0, %v3271_v55, 0.0 }
  0x7c   : > { %550 = vadd.xlane.f32.xlu1 %v549_v14  ;;  %547 = vadd.xlane.f32.xlu0 %v546_v15 }
  0x80   : > { %556 = vadd.xlane.f32.xlu1 %v555_v30  ;;  %553 = vadd.xlane.f32.xlu0 %v552_v31 }
  0x84   : > { %562 = vadd.xlane.f32.xlu1 %v561_v46  ;;  %559 = vadd.xlane.f32.xlu0 %v558_v47 }
  0x88   : > { %568 = vadd.xlane.f32.xlu1 %v567_v62  ;;  %565 = vadd.xlane.f32.xlu0 %v564_v63 }
  0xa9   : > { %v404_v14 = vpop.xlane.xlu0 %403  ;;  %v410_v15 = vpop.xlane.xlu1 %409 }
  0xaa   : > { %v570_v30 = vmul.f32 0.020408163, %v404_v14  ;;  %v572_v31 = vmul.f32 0.020408163, %v410_v15 }
  0xac   : > { %v3278_v39 = vsub.f32 %v2998_v0, %v570_v30  ;;  %v3281_v38 = vsub.f32 %v3001_v1, %v572_v31 }
  0xad   : > { %v407_v46 = vpop.xlane.xlu0 %406  ;;  %v413_v47 = vpop.xlane.xlu1 %412 }
  0xae   : > { %4370 = vst [vmem:[#allocation8_spill] sm:$0xff] %v3281_v38  ;;  %v571_v23 = vmul.f32 0.020408163, %v407_v46  ;;  %v573_v22 = vmul.f32 0.020408163, %v413_v47  ;;  %v682_v54 = vmul.f32 %v3278_v39, %v3278_v39  ;;  %v684_v62 = vmul.f32 %v3281_v38, %v3281_v38 }
  0xb0   : > { %v3288_v63 = vsub.f32 %v3004_v2, %v571_v23  ;;  %v3291_v14 = vsub.f32 %v3011_v5, %v573_v22  ;;  %v738_v0 = vsel %vm401_vm0, %v682_v54, 0.0  ;;  %v744_v15 = vsel %vm401_vm0, %v684_v62, 0.0 }
  0xb1   : > { %739 = vadd.xlane.f32.xlu0 %v738_v0  ;;  %v419_v1 = vpop.xlane.xlu1 %418  ;;  %v416_v30 = vpop.xlane.xlu0 %415 }
  0xb2   : > { %v575_v31 = vmul.f32 0.020408163, %v419_v1  ;;  %v683_v46 = vmul.f32 %v3288_v63, %v3288_v63  ;;  %v685_v47 = vmul.f32 %v3291_v14, %v3291_v14  ;;  %v574_v38 = vmul.f32 0.020408163, %v416_v30 }
  0xb4   : > { %v3300_v2 = vsub.f32 %v3018_v8, %v575_v31  ;;  %v741_v5 = vsel %vm401_vm0, %v683_v46, 0.0  ;;  %v3304_v22 = vsub.f32 %v3021_v9, %v574_v38  ;;  %v747_v54 = vsel %vm401_vm0, %v685_v47, 0.0 }
  0xb5   : > { %742 = vadd.xlane.f32.xlu1 %v741_v5  ;;  %v425_v23 = vpop.xlane.xlu1 %424  ;;  %745 = vadd.xlane.f32.xlu0 %v744_v15  ;;  %v422_v62 = vpop.xlane.xlu0 %421 }
  0xb6   : > { %v577_v0 = vmul.f32 0.020408163, %v425_v23  ;;  %v687_v1 = vmul.f32 %v3300_v2, %v3300_v2  ;;  %v686_v30 = vmul.f32 %v3304_v22, %v3304_v22  ;;  %v576_v8 = vmul.f32 0.020408163, %v422_v62 }
  0xb8   : > { %v3312_v31 = vsub.f32 %v3028_v12, %v577_v0  ;;  %v750_v9 = vsel %vm401_vm0, %v686_v30, 0.0  ;;  %v3316_v38 = vsub.f32 %v3031_v13, %v576_v8  ;;  %v753_v46 = vsel %vm401_vm0, %v687_v1, 0.0 }
  0xb9   : > { %748 = vadd.xlane.f32.xlu1 %v747_v54  ;;  %v431_v15 = vpop.xlane.xlu1 %430  ;;  %751 = vadd.xlane.f32.xlu0 %v750_v9  ;;  %v428_v47 = vpop.xlane.xlu0 %427 }
  0xba   : > { %4371 = vst [vmem:[#allocation9_spill] sm:$0xff] %v3316_v38  ;;  %v579_v5 = vmul.f32 0.020408163, %v431_v15  ;;  %v689_v23 = vmul.f32 %v3312_v31, %v3312_v31  ;;  %v688_v62 = vmul.f32 %v3316_v38, %v3316_v38  ;;  %v578_v12 = vmul.f32 0.020408163, %v428_v47 }
  0xbc   : > { %v3324_v0 = vsub.f32 %v3038_v16, %v579_v5  ;;  %v756_v13 = vsel %vm401_vm0, %v688_v62, 0.0  ;;  %v3328_v54 = vsub.f32 %v3041_v17, %v578_v12  ;;  %v759_v30 = vsel %vm401_vm0, %v689_v23, 0.0 }
  0xbd   : > { %754 = vadd.xlane.f32.xlu1 %v753_v46  ;;  %v437_v1 = vpop.xlane.xlu1 %436  ;;  %757 = vadd.xlane.f32.xlu0 %v756_v13  ;;  %v434_v8 = vpop.xlane.xlu0 %433 }
  0xbe   : > { %v581_v9 = vmul.f32 0.020408163, %v437_v1  ;;  %v691_v15 = vmul.f32 %v3324_v0, %v3324_v0  ;;  %v580_v38 = vmul.f32 0.020408163, %v434_v8  ;;  %v690_v16 = vmul.f32 %v3328_v54, %v3328_v54 }
  0xc0   : > { %v3336_v47 = vsub.f32 %v3048_v20, %v581_v9  ;;  %v3339_v17 = vsub.f32 %v3051_v21, %v580_v38  ;;  %v762_v46 = vsel %vm401_vm0, %v690_v16, 0.0  ;;  %v765_v23 = vsel %vm401_vm0, %v691_v15, 0.0 }
  0xc1   : > { %760 = vadd.xlane.f32.xlu1 %v759_v30  ;;  %v443_v5 = vpop.xlane.xlu1 %442  ;;  %763 = vadd.xlane.f32.xlu0 %v762_v46  ;;  %v440_v62 = vpop.xlane.xlu0 %439 }
  0xc2   : > { %v583_v12 = vmul.f32 0.020408163, %v443_v5  ;;  %v693_v13 = vmul.f32 %v3336_v47, %v3336_v47  ;;  %v582_v1 = vmul.f32 0.020408163, %v440_v62  ;;  %v692_v20 = vmul.f32 %v3339_v17, %v3339_v17 }
  0xc4   : > { %v3348_v8 = vsub.f32 %v3058_v24, %v583_v12  ;;  %v3351_v21 = vsub.f32 %v3061_v25, %v582_v1  ;;  %v768_v38 = vsel %vm401_vm0, %v692_v20, 0.0  ;;  %v771_v9 = vsel %vm401_vm0, %v693_v13, 0.0 }
  0xc5   : > { %766 = vadd.xlane.f32.xlu1 %v765_v23  ;;  %v449_v30 = vpop.xlane.xlu1 %448  ;;  %769 = vadd.xlane.f32.xlu0 %v768_v38  ;;  %v446_v15 = vpop.xlane.xlu0 %445 }
  0xc6   : > { %v585_v16 = vmul.f32 0.020408163, %v449_v30  ;;  %v695_v46 = vmul.f32 %v3348_v8, %v3348_v8  ;;  %v584_v5 = vmul.f32 0.020408163, %v446_v15  ;;  %v694_v24 = vmul.f32 %v3351_v21, %v3351_v21 }
  0xc8   : > { %v3360_v62 = vsub.f32 %v3068_v28, %v585_v16  ;;  %v3363_v25 = vsub.f32 %v3071_v29, %v584_v5  ;;  %v774_v23 = vsel %vm401_vm0, %v694_v24, 0.0  ;;  %v777_v13 = vsel %vm401_vm0, %v695_v46, 0.0 }
  0xc9   : > { %772 = vadd.xlane.f32.xlu1 %v771_v9  ;;  %v455_v12 = vpop.xlane.xlu1 %454  ;;  %775 = vadd.xlane.f32.xlu0 %v774_v23  ;;  %v452_v1 = vpop.xlane.xlu0 %451 }
  0xca   : > { %v587_v20 = vmul.f32 0.020408163, %v455_v12  ;;  %v697_v38 = vmul.f32 %v3360_v62, %v3360_v62  ;;  %v586_v30 = vmul.f32 0.020408163, %v452_v1  ;;  %v696_v28 = vmul.f32 %v3363_v25, %v3363_v25 }
  0xcc   : > { %v3372_v15 = vsub.f32 %v3078_v32, %v587_v20  ;;  %v3375_v29 = vsub.f32 %v3081_v33, %v586_v30  ;;  %v780_v9 = vsel %vm401_vm0, %v696_v28, 0.0  ;;  %v783_v46 = vsel %vm401_vm0, %v697_v38, 0.0 }
  0xcd   : > { %778 = vadd.xlane.f32.xlu1 %v777_v13  ;;  %v461_v16 = vpop.xlane.xlu1 %460  ;;  %781 = vadd.xlane.f32.xlu0 %v780_v9  ;;  %v458_v5 = vpop.xlane.xlu0 %457  ;;  %v2929_v20 = vmov 0  }
  0xce   : > { %v589_v24 = vmul.f32 0.020408163, %v461_v16  ;;  %v699_v23 = vmul.f32 %v3372_v15, %v3372_v15  ;;  %v588_v12 = vmul.f32 0.020408163, %v458_v5  ;;  %v698_v32 = vmul.f32 %v3375_v29, %v3375_v29  ;;  %2723 = vset.pattern.permute.xlu0 %v2929_v20  ;;  %2724 = vset.pattern.permute.xlu1 %v2929_v20 }
  0xd0   : > { %v3384_v1 = vsub.f32 %v3088_v36, %v589_v24  ;;  %v3387_v33 = vsub.f32 %v3091_v37, %v588_v12  ;;  %v786_v13 = vsel %vm401_vm0, %v698_v32, 0.0  ;;  %v789_v30 = vsel %vm401_vm0, %v699_v23, 0.0 }
  0xd1   : > { %784 = vadd.xlane.f32.xlu1 %v783_v46  ;;  %v467_v38 = vpop.xlane.xlu1 %466  ;;  %787 = vadd.xlane.f32.xlu0 %v786_v13  ;;  %v464_v28 = vpop.xlane.xlu0 %463 }
  0xd2   : > { %v591_v9 = vmul.f32 0.020408163, %v467_v38  ;;  %v701_v16 = vmul.f32 %v3384_v1, %v3384_v1  ;;  %v590_v36 = vmul.f32 0.020408163, %v464_v28  ;;  %v700_v37 = vmul.f32 %v3387_v33, %v3387_v33 }
  0xd4   : > { %v3396_v5 = vsub.f32 %v3098_v40, %v591_v9  ;;  %v3399_v24 = vsub.f32 %v3101_v41, %v590_v36  ;;  %v792_v46 = vsel %vm401_vm0, %v700_v37, 0.0  ;;  %v795_v12 = vsel %vm401_vm0, %v701_v16, 0.0 }
  0xd5   : > { %790 = vadd.xlane.f32.xlu1 %v789_v30  ;;  %v473_v23 = vpop.xlane.xlu1 %472  ;;  %793 = vadd.xlane.f32.xlu0 %v792_v46  ;;  %v470_v32 = vpop.xlane.xlu0 %469 }
  0xd6   : > { %v593_v13 = vmul.f32 0.020408163, %v473_v23  ;;  %v703_v20 = vmul.f32 %v3396_v5, %v3396_v5  ;;  %v592_v38 = vmul.f32 0.020408163, %v470_v32  ;;  %v702_v40 = vmul.f32 %v3399_v24, %v3399_v24 }
  0xd8   : > { %v3408_v28 = vsub.f32 %v3108_v44, %v593_v13  ;;  %v3411_v41 = vsub.f32 %v3111_v45, %v592_v38  ;;  %v798_v30 = vsel %vm401_vm0, %v702_v40, 0.0  ;;  %v801_v16 = vsel %vm401_vm0, %v703_v20, 0.0 }
  0xd9   : > { %796 = vadd.xlane.f32.xlu1 %v795_v12  ;;  %v479_v9 = vpop.xlane.xlu1 %478  ;;  %799 = vadd.xlane.f32.xlu0 %v798_v30  ;;  %v476_v36 = vpop.xlane.xlu0 %475 }
  0xda   : > { %v595_v37 = vmul.f32 0.020408163, %v479_v9  ;;  %v705_v46 = vmul.f32 %v3408_v28, %v3408_v28  ;;  %v594_v23 = vmul.f32 0.020408163, %v476_v36  ;;  %v704_v44 = vmul.f32 %v3411_v41, %v3411_v41 }
  0xdc   : > { %v3420_v32 = vsub.f32 %v3118_v48, %v595_v37  ;;  %v3423_v45 = vsub.f32 %v3121_v49, %v594_v23  ;;  %v804_v12 = vsel %vm401_vm0, %v704_v44, 0.0  ;;  %v807_v20 = vsel %vm401_vm0, %v705_v46, 0.0 }
  0xdd   : > { %802 = vadd.xlane.f32.xlu1 %v801_v16  ;;  %v485_v13 = vpop.xlane.xlu1 %484  ;;  %805 = vadd.xlane.f32.xlu0 %v804_v12  ;;  %v482_v38 = vpop.xlane.xlu0 %481 }
  0xde   : > { %4372 = vst [vmem:[#allocation10_spill] sm:$0xff] %v3423_v45  ;;  %v597_v40 = vmul.f32 0.020408163, %v485_v13  ;;  %v707_v30 = vmul.f32 %v3420_v32, %v3420_v32  ;;  %v596_v9 = vmul.f32 0.020408163, %v482_v38  ;;  %v706_v48 = vmul.f32 %v3423_v45, %v3423_v45  ;;  %v1191_v45 = vld [vmem:[%s3845_s12 + $0x28] sm:$0xff] }
  0xe0   : > { %v3432_v36 = vsub.f32 %v3128_v52, %v597_v40  ;;  %v3435_v49 = vsub.f32 %v3131_v53, %v596_v9  ;;  %v810_v16 = vsel %vm401_vm0, %v706_v48, 0.0  ;;  %v813_v46 = vsel %vm401_vm0, %v707_v30, 0.0 }
  0xe1   : > { %808 = vadd.xlane.f32.xlu1 %v807_v20  ;;  %v491_v37 = vpop.xlane.xlu1 %490  ;;  %811 = vadd.xlane.f32.xlu0 %v810_v16  ;;  %v488_v23 = vpop.xlane.xlu0 %487 }
  0xe2   : > { %4373 = vst [vmem:[#allocation11_spill] sm:$0xff] %v3435_v49  ;;  %v599_v44 = vmul.f32 0.020408163, %v491_v37  ;;  %v709_v12 = vmul.f32 %v3432_v36, %v3432_v36  ;;  %v598_v13 = vmul.f32 0.020408163, %v488_v23  ;;  %v708_v52 = vmul.f32 %v3435_v49, %v3435_v49 }
  0xe4   : > { %v3444_v38 = vsub.f32 %v3138_v56, %v599_v44  ;;  %v3447_v53 = vsub.f32 %v3141_v57, %v598_v13  ;;  %v816_v20 = vsel %vm401_vm0, %v708_v52, 0.0  ;;  %v819_v30 = vsel %vm401_vm0, %v709_v12, 0.0 }
  0xe5   : > { %814 = vadd.xlane.f32.xlu1 %v813_v46  ;;  %v497_v40 = vpop.xlane.xlu1 %496  ;;  %817 = vadd.xlane.f32.xlu0 %v816_v20  ;;  %v494_v9 = vpop.xlane.xlu0 %493 }
  0xe6   : > { %4374 = vst [vmem:[#allocation12_spill] sm:$0xff] %v3447_v53  ;;  %v601_v48 = vmul.f32 0.020408163, %v497_v40  ;;  %v711_v16 = vmul.f32 %v3444_v38, %v3444_v38  ;;  %v600_v37 = vmul.f32 0.020408163, %v494_v9  ;;  %v710_v56 = vmul.f32 %v3447_v53, %v3447_v53 }
  0xe8   : > { %v3456_v23 = vsub.f32 %v3148_v60, %v601_v48  ;;  %v3459_v57 = vsub.f32 %v3151_v61, %v600_v37  ;;  %v822_v46 = vsel %vm401_vm0, %v710_v56, 0.0  ;;  %v825_v12 = vsel %vm401_vm0, %v711_v16, 0.0 }
  0xe9   : > { %820 = vadd.xlane.f32.xlu1 %v819_v30  ;;  %v503_v44 = vpop.xlane.xlu1 %502  ;;  %823 = vadd.xlane.f32.xlu0 %v822_v46  ;;  %v500_v13 = vpop.xlane.xlu0 %499 }
  0xea   : > { %4375 = vst [vmem:[#allocation13_spill] sm:$0xff] %v3456_v23  ;;  %4376 = vst [vmem:[#allocation14_spill] sm:$0xff] %v3459_v57  ;;  %v603_v52 = vmul.f32 0.020408163, %v503_v44  ;;  %v713_v20 = vmul.f32 %v3456_v23, %v3456_v23  ;;  %v602_v40 = vmul.f32 0.020408163, %v500_v13  ;;  %v712_v60 = vmul.f32 %v3459_v57, %v3459_v57 }
  0xec   : > { %v3468_v9 = vsub.f32 %v3158_v3, %v603_v52  ;;  %v3471_v61 = vsub.f32 %v3161_v4, %v602_v40  ;;  %v828_v30 = vsel %vm401_vm0, %v712_v60, 0.0  ;;  %v831_v16 = vsel %vm401_vm0, %v713_v20, 0.0 }
  0xed   : > { %826 = vadd.xlane.f32.xlu1 %v825_v12  ;;  %v509_v48 = vpop.xlane.xlu1 %508  ;;  %829 = vadd.xlane.f32.xlu0 %v828_v30  ;;  %v506_v37 = vpop.xlane.xlu0 %505 }
  0xee   : > { %4377 = vst [vmem:[#allocation15_spill] sm:$0xff] %v3468_v9  ;;  %4378 = vst [vmem:[#allocation16_spill] sm:$0xff] %v3471_v61  ;;  %v605_v56 = vmul.f32 0.020408163, %v509_v48  ;;  %v715_v46 = vmul.f32 %v3468_v9, %v3468_v9  ;;  %v604_v44 = vmul.f32 0.020408163, %v506_v37  ;;  %v714_v3 = vmul.f32 %v3471_v61, %v3471_v61 }
  0xf0   : > { %v3480_v13 = vsub.f32 %v3168_v10, %v605_v56  ;;  %v3483_v4 = vsub.f32 %v3171_v11, %v604_v44  ;;  %v834_v12 = vsel %vm401_vm0, %v714_v3, 0.0  ;;  %v837_v20 = vsel %vm401_vm0, %v715_v46, 0.0 }
  0xf1   : > { %832 = vadd.xlane.f32.xlu1 %v831_v16  ;;  %v515_v52 = vpop.xlane.xlu1 %514  ;;  %835 = vadd.xlane.f32.xlu0 %v834_v12  ;;  %v512_v40 = vpop.xlane.xlu0 %511 }
  0xf2   : > { %4379 = vst [vmem:[#allocation17_spill] sm:$0xff] %v3480_v13  ;;  %4380 = vst [vmem:[#allocation18_spill] sm:$0xff] %v3483_v4  ;;  %v607_v60 = vmul.f32 0.020408163, %v515_v52  ;;  %v717_v30 = vmul.f32 %v3480_v13, %v3480_v13  ;;  %v606_v48 = vmul.f32 0.020408163, %v512_v40  ;;  %v716_v10 = vmul.f32 %v3483_v4, %v3483_v4 }
  0xf4   : > { %v3492_v37 = vsub.f32 %v3178_v18, %v607_v60  ;;  %v3495_v11 = vsub.f32 %v3181_v19, %v606_v48  ;;  %v840_v16 = vsel %vm401_vm0, %v716_v10, 0.0  ;;  %v843_v46 = vsel %vm401_vm0, %v717_v30, 0.0 }
  0xf5   : > { %838 = vadd.xlane.f32.xlu1 %v837_v20  ;;  %v521_v56 = vpop.xlane.xlu1 %520  ;;  %841 = vadd.xlane.f32.xlu0 %v840_v16  ;;  %v518_v44 = vpop.xlane.xlu0 %517 }
  0xf6   : > { %4381 = vst [vmem:[#allocation19_spill] sm:$0xff] %v3492_v37  ;;  %4382 = vst [vmem:[#allocation20_spill] sm:$0xff] %v3495_v11  ;;  %v609_v3 = vmul.f32 0.020408163, %v521_v56  ;;  %v719_v12 = vmul.f32 %v3492_v37, %v3492_v37  ;;  %v608_v52 = vmul.f32 0.020408163, %v518_v44  ;;  %v718_v18 = vmul.f32 %v3495_v11, %v3495_v11 }
  0xf8   : > { %v3504_v40 = vsub.f32 %v3188_v26, %v609_v3  ;;  %v3507_v19 = vsub.f32 %v3191_v27, %v608_v52  ;;  %v846_v20 = vsel %vm401_vm0, %v718_v18, 0.0  ;;  %v849_v30 = vsel %vm401_vm0, %v719_v12, 0.0 }
  0xf9   : > { %844 = vadd.xlane.f32.xlu1 %v843_v46  ;;  %v527_v60 = vpop.xlane.xlu1 %526  ;;  %847 = vadd.xlane.f32.xlu0 %v846_v20  ;;  %v524_v48 = vpop.xlane.xlu0 %523 }
  0xfa   : > { %4383 = vst [vmem:[#allocation21_spill] sm:$0xff] %v3504_v40  ;;  %4384 = vst [vmem:[#allocation22_spill] sm:$0xff] %v3507_v19  ;;  %v611_v10 = vmul.f32 0.020408163, %v527_v60  ;;  %v721_v16 = vmul.f32 %v3504_v40, %v3504_v40  ;;  %v610_v56 = vmul.f32 0.020408163, %v524_v48  ;;  %v720_v26 = vmul.f32 %v3507_v19, %v3507_v19 }
  0xfc   : > { %v3516_v44 = vsub.f32 %v3198_v34, %v611_v10  ;;  %v3519_v27 = vsub.f32 %v3201_v35, %v610_v56  ;;  %v852_v46 = vsel %vm401_vm0, %v720_v26, 0.0  ;;  %v855_v12 = vsel %vm401_vm0, %v721_v16, 0.0 }
  0xfd   : > { %850 = vadd.xlane.f32.xlu1 %v849_v30  ;;  %v533_v3 = vpop.xlane.xlu1 %532  ;;  %853 = vadd.xlane.f32.xlu0 %v852_v46  ;;  %v530_v52 = vpop.xlane.xlu0 %529 }
  0xfe   : > { %4385 = vst [vmem:[#allocation23_spill] sm:$0xff] %v3516_v44  ;;  %4386 = vst [vmem:[#allocation24_spill] sm:$0xff] %v3519_v27  ;;  %v613_v18 = vmul.f32 0.020408163, %v533_v3  ;;  %v723_v20 = vmul.f32 %v3516_v44, %v3516_v44  ;;  %v612_v60 = vmul.f32 0.020408163, %v530_v52  ;;  %v722_v34 = vmul.f32 %v3519_v27, %v3519_v27 }
 0x100   : > { %v3528_v48 = vsub.f32 %v3208_v42, %v613_v18  ;;  %v3531_v35 = vsub.f32 %v3211_v43, %v612_v60  ;;  %v858_v30 = vsel %vm401_vm0, %v722_v34, 0.0  ;;  %v861_v16 = vsel %vm401_vm0, %v723_v20, 0.0 }
 0x101   : > { %856 = vadd.xlane.f32.xlu1 %v855_v12  ;;  %v539_v10 = vpop.xlane.xlu1 %538  ;;  %859 = vadd.xlane.f32.xlu0 %v858_v30  ;;  %v536_v56 = vpop.xlane.xlu0 %535 }
 0x102   : > { %4387 = vst [vmem:[#allocation25_spill] sm:$0xff] %v3528_v48  ;;  %4388 = vst [vmem:[#allocation26_spill] sm:$0xff] %v3531_v35  ;;  %v615_v26 = vmul.f32 0.020408163, %v539_v10  ;;  %v725_v46 = vmul.f32 %v3528_v48, %v3528_v48  ;;  %v614_v3 = vmul.f32 0.020408163, %v536_v56  ;;  %v724_v42 = vmul.f32 %v3531_v35, %v3531_v35 }
 0x104   : > { %v3540_v52 = vsub.f32 %v3218_v50, %v615_v26  ;;  %v3543_v43 = vsub.f32 %v3221_v51, %v614_v3  ;;  %v864_v12 = vsel %vm401_vm0, %v724_v42, 0.0  ;;  %v867_v20 = vsel %vm401_vm0, %v725_v46, 0.0 }
 0x105   : > { %862 = vadd.xlane.f32.xlu1 %v861_v16  ;;  %v545_v18 = vpop.xlane.xlu1 %544  ;;  %865 = vadd.xlane.f32.xlu0 %v864_v12  ;;  %v542_v60 = vpop.xlane.xlu0 %541 }
 0x106   : > { %4389 = vst [vmem:[#allocation27_spill] sm:$0xff] %v3540_v52  ;;  %4390 = vst [vmem:[#allocation28_spill] sm:$0xff] %v3543_v43  ;;  %v617_v34 = vmul.f32 0.020408163, %v545_v18  ;;  %v727_v30 = vmul.f32 %v3540_v52, %v3540_v52  ;;  %v616_v10 = vmul.f32 0.020408163, %v542_v60  ;;  %v726_v50 = vmul.f32 %v3543_v43, %v3543_v43 }
 0x108   : > { %v3552_v56 = vsub.f32 %v3228_v58, %v617_v34  ;;  %v3555_v51 = vsub.f32 %v3231_v59, %v616_v10  ;;  %v870_v16 = vsel %vm401_vm0, %v726_v50, 0.0  ;;  %v873_v46 = vsel %vm401_vm0, %v727_v30, 0.0 }
 0x109   : > { %868 = vadd.xlane.f32.xlu1 %v867_v20  ;;  %v551_v26 = vpop.xlane.xlu1 %550  ;;  %871 = vadd.xlane.f32.xlu0 %v870_v16  ;;  %v548_v3 = vpop.xlane.xlu0 %547 }
 0x10a   : > { %4391 = vst [vmem:[#allocation29_spill] sm:$0xff] %v3552_v56  ;;  %4392 = vst [vmem:[#allocation30_spill] sm:$0xff] %v3555_v51  ;;  %v619_v42 = vmul.f32 0.020408163, %v551_v26  ;;  %v729_v12 = vmul.f32 %v3552_v56, %v3552_v56  ;;  %v618_v18 = vmul.f32 0.020408163, %v548_v3  ;;  %v728_v58 = vmul.f32 %v3555_v51, %v3555_v51 }
 0x10b   : > { %v4395_v3 = vld [vmem:[#allocation3_spill] sm:$0xff] }
 0x10c   : > { %v3564_v60 = vsub.f32 %v3238_v6, %v619_v42  ;;  %v3567_v59 = vsub.f32 %v3241_v7, %v618_v18  ;;  %v876_v20 = vsel %vm401_vm0, %v728_v58, 0.0  ;;  %v879_v30 = vsel %vm401_vm0, %v729_v12, 0.0  ;;  %v4397_v7 = vld [vmem:[#allocation4_spill] sm:$0xff] }
 0x10d   : > { %874 = vadd.xlane.f32.xlu1 %v873_v46  ;;  %v557_v34 = vpop.xlane.xlu1 %556  ;;  %877 = vadd.xlane.f32.xlu0 %v876_v20  ;;  %v554_v10 = vpop.xlane.xlu0 %553 }
 0x10e   : > { %4393 = vst [vmem:[#allocation31_spill] sm:$0xff] %v3564_v60  ;;  %4394 = vst [vmem:[#allocation32_spill] sm:$0xff] %v3567_v59  ;;  %v621_v50 = vmul.f32 0.020408163, %v557_v34  ;;  %v731_v16 = vmul.f32 %v3564_v60, %v3564_v60  ;;  %v620_v26 = vmul.f32 0.020408163, %v554_v10  ;;  %v730_v6 = vmul.f32 %v3567_v59, %v3567_v59 }
 0x110   : > { %v3576_v42 = vsub.f32 %v4395_v3, %v621_v50  ;;  %v3579_v18 = vsub.f32 %v4397_v7, %v620_v26  ;;  %v882_v46 = vsel %vm401_vm0, %v730_v6, 0.0  ;;  %v885_v58 = vsel %vm401_vm0, %v731_v16, 0.0  ;;  %v4399_v3 = vld [vmem:[#allocation5_spill] sm:$0xff]  ;;  %v4401_v26 = vld [vmem:[#allocation6_spill] sm:$0xff] }
 0x111   : > { %880 = vadd.xlane.f32.xlu1 %v879_v30  ;;  %v563_v12 = vpop.xlane.xlu1 %562  ;;  %883 = vadd.xlane.f32.xlu0 %v882_v46  ;;  %v560_v20 = vpop.xlane.xlu0 %559 }
 0x112   : > { %4396 = vst [vmem:[#allocation3_spill] sm:$0xff] %v3576_v42  ;;  %4398 = vst [vmem:[#allocation4_spill] sm:$0xff] %v3579_v18  ;;  %v623_v34 = vmul.f32 0.020408163, %v563_v12  ;;  %v733_v10 = vmul.f32 %v3576_v42, %v3576_v42  ;;  %v622_v51 = vmul.f32 0.020408163, %v560_v20  ;;  %v732_v50 = vmul.f32 %v3579_v18, %v3579_v18 }
 0x114   : > { %v3588_v59 = vsub.f32 %v4399_v3, %v623_v34  ;;  %v3591_v7 = vsub.f32 %v4401_v26, %v622_v51  ;;  %v888_v30 = vsel %vm401_vm0, %v732_v50, 0.0  ;;  %v891_v6 = vsel %vm401_vm0, %v733_v10, 0.0  ;;  %v4403_v3 = vld [vmem:[#allocation7_spill] sm:$0xff] }
 0x115   : > { %886 = vadd.xlane.f32.xlu1 %v885_v58  ;;  %v569_v16 = vpop.xlane.xlu1 %568  ;;  %889 = vadd.xlane.f32.xlu0 %v888_v30  ;;  %v566_v46 = vpop.xlane.xlu0 %565 }
 0x116   : > { %4400 = vst [vmem:[#allocation5_spill] sm:$0xff] %v3588_v59  ;;  %4402 = vst [vmem:[#allocation6_spill] sm:$0xff] %v3591_v7  ;;  %v625_v12 = vmul.f32 0.020408163, %v569_v16  ;;  %v735_v20 = vmul.f32 %v3588_v59, %v3588_v59  ;;  %v624_v42 = vmul.f32 0.020408163, %v566_v46  ;;  %v734_v34 = vmul.f32 %v3591_v7, %v3591_v7 }
 0x118   : > { %v3600_v18 = vsub.f32 %v4403_v3, %v625_v12  ;;  %v3603_v51 = vsub.f32 %v3271_v55, %v624_v42  ;;  %v894_v58 = vsel %vm401_vm0, %v734_v34, 0.0  ;;  %v897_v10 = vsel %vm401_vm0, %v735_v20, 0.0 }
 0x119   : > { %892 = vadd.xlane.f32.xlu1 %v891_v6  ;;  %895 = vadd.xlane.f32.xlu0 %v894_v58 }
 0x11a   : > { %4404 = vst [vmem:[#allocation7_spill] sm:$0xff] %v3600_v18  ;;  %4405 = vst [vmem:[#allocation33_spill] sm:$0xff] %v3603_v51  ;;  %v737_v50 = vmul.f32 %v3600_v18, %v3600_v18  ;;  %v736_v26 = vmul.f32 %v3603_v51, %v3603_v51  ;;  %v1076_v18 = vld [vmem:[%s3617_s6 + $0x10] sm:$0xff] }
 0x11c   : > { %v900_v30 = vsel %vm401_vm0, %v736_v26, 0.0  ;;  %v903_v16 = vsel %vm401_vm0, %v737_v50, 0.0 }
 0x11d   : > { %898 = vadd.xlane.f32.xlu1 %v897_v10  ;;  %901 = vadd.xlane.f32.xlu0 %v900_v30 }
 0x121   : > { %904 = vadd.xlane.f32.xlu1 %v903_v16 }
 0x13e   : > { %v740_v55 = vpop.xlane.xlu0 %739 }
 0x13f   : > { %v906_v42 = vmul.f32 0.020408163, %v740_v55 }
 0x141   : > { %v962_v6 = vadd.f32 1e-05, %v906_v42 }
 0x142   : > { %v743_v46 = vpop.xlane.xlu1 %742  ;;  %v746_v12 = vpop.xlane.xlu0 %745 }
 0x143   : > { %2725 = vrsqrt.f32 %v962_v6  ;;  %v907_v20 = vmul.f32 0.020408163, %v743_v46  ;;  %v908_v34 = vmul.f32 0.020408163, %v746_v12  ;;  %v1074_v6 = vld [vmem:[%s3617_s6] sm:$0xff] }
 0x145   : > { %v963_v3 = vadd.f32 1e-05, %v907_v20  ;;  %v964_v58 = vadd.f32 1e-05, %v908_v34 }
 0x146   : > { %v749_v7 = vpop.xlane.xlu1 %748  ;;  %v752_v51 = vpop.xlane.xlu0 %751 }
 0x147   : > { %2727 = vrsqrt.f32 %v963_v3  ;;  %v909_v26 = vmul.f32 0.020408163, %v749_v7  ;;  %v910_v10 = vmul.f32 0.020408163, %v752_v51  ;;  %v1075_v3 = vld [vmem:[%s3617_s6 + $0x8] sm:$0xff] }
 0x148   : > { %2729 = vrsqrt.f32 %v964_v58 }
 0x149   : > { %v965_v50 = vadd.f32 1e-05, %v909_v26  ;;  %v966_v42 = vadd.f32 1e-05, %v910_v10 }
 0x14a   : > { %v755_v30 = vpop.xlane.xlu1 %754  ;;  %v758_v16 = vpop.xlane.xlu0 %757 }
 0x14b   : > { %2731 = vrsqrt.f32 %v965_v50  ;;  %v911_v55 = vmul.f32 0.020408163, %v755_v30  ;;  %v912_v51 = vmul.f32 0.020408163, %v758_v16 }
 0x14c   : > { %2733 = vrsqrt.f32 %v966_v42 }
 0x14d   : > { %v2726_v46 = vpop.eup %2725  ;;  %v967_v34 = vadd.f32 1e-05, %v911_v55  ;;  %v968_v50 = vadd.f32 1e-05, %v912_v51  ;;  %v1077_v55 = vld [vmem:[%s3617_s6 + $0x18] sm:$0xff] }
 0x14e   : > { %v761_v12 = vpop.xlane.xlu1 %760  ;;  %v1130_v7 = vmul.f32 %v2726_v46, %v1074_v6  ;;  %v764_v20 = vpop.xlane.xlu0 %763 }
 0x14f   : > { %v913_v59 = vmul.f32 0.020408163, %v761_v12  ;;  %2735 = vrsqrt.f32 %v967_v34  ;;  %v1078_v34 = vld [vmem:[%s3617_s6 + $0x20] sm:$0xff] }
 0x150   : > { %1244 = vperm.xlu0 %2723, %v1130_v7   ;;  %2737 = vrsqrt.f32 %v968_v50  ;;  %v914_v7 = vmul.f32 0.020408163, %v764_v20 }
 0x151   : > { %v2728_v58 = vpop.eup %2727  ;;  %v969_v42 = vadd.f32 1e-05, %v913_v59 }
 0x152   : > { %v2730_v26 = vpop.eup %2729  ;;  %v767_v43 = vpop.xlane.xlu1 %766  ;;  %v1131_v60 = vmul.f32 %v2728_v58, %v1075_v3 }
 0x153   : > { %v770_v30 = vpop.xlane.xlu0 %769  ;;  %v915_v10 = vmul.f32 0.020408163, %v767_v43  ;;  %v1132_v6 = vmul.f32 %v2730_v26, %v1076_v18 }
 0x154   : > { %1249 = vperm.xlu1 %2724, %v1131_v60   ;;  %v970_v60 = vadd.f32 1e-05, %v914_v7  ;;  %v916_v18 = vmul.f32 0.020408163, %v770_v30 }
 0x155   : > { %v2732_v16 = vpop.eup %2731  ;;  %v971_v46 = vadd.f32 1e-05, %v915_v10 }
 0x156   : > { %v773_v35 = vpop.xlane.xlu1 %772  ;;  %v1133_v12 = vmul.f32 %v2732_v16, %v1077_v55  ;;  %v2734_v51 = vpop.eup %2733  ;;  %v1083_v55 = vld [vmem:[%s3617_s6 + $0x48] sm:$0xff] }
 0x157   : > { %v776_v56 = vpop.xlane.xlu0 %775  ;;  %2739 = vrsqrt.f32 %v971_v46  ;;  %v917_v27 = vmul.f32 0.020408163, %v773_v35  ;;  %v1134_v26 = vmul.f32 %v2734_v51, %v1078_v34  ;;  %v1079_v35 = vld [vmem:[%s3617_s6 + $0x28] sm:$0xff] }
 0x158   : > { %1254 = vperm.xlu1 %2724, %v1132_v6   ;;  %2741 = vrsqrt.f32 %v969_v42  ;;  %v972_v6 = vadd.f32 1e-05, %v916_v18  ;;  %v918_v16 = vmul.f32 0.020408163, %v776_v56  ;;  %v1085_v18 = vld [vmem:[%s3617_s6 + $0x58] sm:$0xff] }
 0x159   : > { %v973_v3 = vadd.f32 1e-05, %v917_v27  ;;  %v2736_v20 = vpop.eup %2735 }
 0x15a   : > { %v779_v43 = vpop.xlane.xlu1 %778  ;;  %v2738_v30 = vpop.eup %2737  ;;  %v1135_v42 = vmul.f32 %v2736_v20, %v1079_v35  ;;  %v1081_v35 = vld [vmem:[%s3617_s6 + $0x38] sm:$0xff] }
 0x15b   : > { %v782_v58 = vpop.xlane.xlu0 %781  ;;  %2743 = vrsqrt.f32 %v973_v3  ;;  %v919_v59 = vmul.f32 0.020408163, %v779_v43  ;;  %v974_v43 = vadd.f32 1e-05, %v918_v16 }
 0x15c   : > { %1259 = vperm.xlu1 %2724, %v1133_v12   ;;  %2745 = vrsqrt.f32 %v970_v60  ;;  %v1080_v12 = vld [vmem:[%s3617_s6 + $0x30] sm:$0xff] }
 0x15d   : > { %v975_v50 = vadd.f32 1e-05, %v919_v59  ;;  %v920_v59 = vmul.f32 0.020408163, %v782_v58 }
 0x15e   : > { %v785_v10 = vpop.xlane.xlu1 %784 }
 0x15f   : > { %v788_v27 = vpop.xlane.xlu0 %787  ;;  %2747 = vrsqrt.f32 %v975_v50  ;;  %v921_v46 = vmul.f32 0.020408163, %v785_v10  ;;  %v1136_v10 = vmul.f32 %v2738_v30, %v1080_v12  ;;  %v1082_v12 = vld [vmem:[%s3617_s6 + $0x40] sm:$0xff] }
 0x160   : > { %1264 = vperm.xlu1 %2724, %v1134_v26   ;;  %2749 = vrsqrt.f32 %v972_v6  ;;  %v976_v6 = vadd.f32 1e-05, %v920_v59 }
 0x161   : > { %v2740_v7 = vpop.eup %2739  ;;  %v977_v3 = vadd.f32 1e-05, %v921_v46 }
 0x162   : > { %v791_v51 = vpop.xlane.xlu1 %790  ;;  %v1139_v34 = vmul.f32 %v2740_v7, %v1083_v55  ;;  %v2742_v50 = vpop.eup %2741  ;;  %v922_v55 = vmul.f32 0.020408163, %v788_v27  ;;  %v1087_v7 = vld [vmem:[%s3617_s6 + $0x68] sm:$0xff] }
 0x163   : > { %v794_v60 = vpop.xlane.xlu0 %793  ;;  %2751 = vrsqrt.f32 %v977_v3  ;;  %v923_v56 = vmul.f32 0.020408163, %v791_v51  ;;  %v1137_v51 = vmul.f32 %v2742_v50, %v1081_v35  ;;  %v1084_v35 = vld [vmem:[%s3617_s6 + $0x50] sm:$0xff] }
 0x164   : > { %1289 = vperm.xlu0 %2723, %v1139_v34   ;;  %1269 = vperm.xlu1 %2724, %v1135_v42   ;;  %2753 = vrsqrt.f32 %v974_v43  ;;  %v978_v43 = vadd.f32 1e-05, %v922_v55 }
 0x165   : > { %v2744_v26 = vpop.eup %2743  ;;  %v979_v20 = vadd.f32 1e-05, %v923_v56 }
 0x166   : > { %v797_v46 = vpop.xlane.xlu1 %796  ;;  %v1141_v52 = vmul.f32 %v2744_v26, %v1085_v18  ;;  %v2746_v3 = vpop.eup %2745  ;;  %v924_v18 = vmul.f32 0.020408163, %v794_v60  ;;  %v1089_v26 = vld [vmem:[%s3617_s6 + $0x78] sm:$0xff] }
 0x167   : > { %v800_v16 = vpop.xlane.xlu0 %799  ;;  %2755 = vrsqrt.f32 %v979_v20  ;;  %v925_v58 = vmul.f32 0.020408163, %v797_v46 }
 0x168   : > { %1299 = vperm.xlu0 %2723, %v1141_v52   ;;  %1274 = vperm.xlu1 %2724, %v1136_v10   ;;  %2757 = vrsqrt.f32 %v976_v6  ;;  %v1138_v52 = vmul.f32 %v2746_v3, %v1082_v12  ;;  %v980_v6 = vadd.f32 1e-05, %v924_v18  ;;  %v1086_v12 = vld [vmem:[%s3617_s6 + $0x60] sm:$0xff] }
 0x169   : > { %v2748_v42 = vpop.eup %2747  ;;  %v981_v30 = vadd.f32 1e-05, %v925_v58 }
 0x16a   : > { %v803_v34 = vpop.xlane.xlu1 %802  ;;  %v1143_v56 = vmul.f32 %v2748_v42, %v1087_v7  ;;  %v2750_v20 = vpop.eup %2749  ;;  %v926_v7 = vmul.f32 0.020408163, %v800_v16  ;;  %v1091_v42 = vld [vmem:[%s3617_s6 + $0x88] sm:$0xff] }
 0x16b   : > { %v806_v59 = vpop.xlane.xlu0 %805  ;;  %2759 = vrsqrt.f32 %v981_v30  ;;  %v927_v27 = vmul.f32 0.020408163, %v803_v34  ;;  %v1140_v34 = vmul.f32 %v2750_v20, %v1084_v35  ;;  %v1088_v35 = vld [vmem:[%s3617_s6 + $0x70] sm:$0xff] }
 0x16c   : > { %1309 = vperm.xlu0 %2723, %v1143_v56   ;;  %1279 = vperm.xlu1 %2724, %v1137_v51   ;;  %2761 = vrsqrt.f32 %v978_v43  ;;  %v982_v43 = vadd.f32 1e-05, %v926_v7 }
 0x16d   : > { %v2752_v10 = vpop.eup %2751  ;;  %v983_v50 = vadd.f32 1e-05, %v927_v27 }
 0x16e   : > { %v809_v46 = vpop.xlane.xlu1 %808  ;;  %v1145_v58 = vmul.f32 %v2752_v10, %v1089_v26  ;;  %v2754_v30 = vpop.eup %2753  ;;  %v928_v26 = vmul.f32 0.020408163, %v806_v59  ;;  %v1093_v10 = vld [vmem:[%s3617_s6 + $0x98] sm:$0xff] }
 0x16f   : > { %v812_v55 = vpop.xlane.xlu0 %811  ;;  %2763 = vrsqrt.f32 %v983_v50  ;;  %v929_v60 = vmul.f32 0.020408163, %v809_v46  ;;  %v1142_v46 = vmul.f32 %v2754_v30, %v1086_v12  ;;  %v1090_v12 = vld [vmem:[%s3617_s6 + $0x80] sm:$0xff] }
 0x170   : > { %1319 = vperm.xlu0 %2723, %v1145_v58   ;;  %1284 = vperm.xlu1 %2724, %v1138_v52   ;;  %2765 = vrsqrt.f32 %v980_v6  ;;  %v984_v6 = vadd.f32 1e-05, %v928_v26 }
 0x171   : > { %v2756_v51 = vpop.eup %2755  ;;  %v985_v3 = vadd.f32 1e-05, %v929_v60 }
 0x172   : > { %v815_v56 = vpop.xlane.xlu1 %814  ;;  %v1147_v27 = vmul.f32 %v2756_v51, %v1091_v42  ;;  %v2758_v50 = vpop.eup %2757  ;;  %v930_v42 = vmul.f32 0.020408163, %v812_v55  ;;  %v1095_v51 = vld [vmem:[%s3617_s6 + $0xa8] sm:$0xff] }
 0x173   : > { %v818_v18 = vpop.xlane.xlu0 %817  ;;  %2767 = vrsqrt.f32 %v985_v3  ;;  %v931_v16 = vmul.f32 0.020408163, %v815_v56  ;;  %v1144_v56 = vmul.f32 %v2758_v50, %v1088_v35  ;;  %v1092_v35 = vld [vmem:[%s3617_s6 + $0x90] sm:$0xff] }
 0x174   : > { %1329 = vperm.xlu0 %2723, %v1147_v27   ;;  %1294 = vperm.xlu1 %2724, %v1140_v34   ;;  %2769 = vrsqrt.f32 %v982_v43  ;;  %v986_v43 = vadd.f32 1e-05, %v930_v42 }
 0x175   : > { %v2760_v52 = vpop.eup %2759  ;;  %v987_v20 = vadd.f32 1e-05, %v931_v16 }
 0x176   : > { %v821_v58 = vpop.xlane.xlu1 %820  ;;  %v1149_v60 = vmul.f32 %v2760_v52, %v1093_v10  ;;  %v2762_v3 = vpop.eup %2761  ;;  %v932_v10 = vmul.f32 0.020408163, %v818_v18  ;;  %v1097_v52 = vld [vmem:[%s3617_s6 + $0xb8] sm:$0xff] }
 0x177   : > { %v824_v7 = vpop.xlane.xlu0 %823  ;;  %2771 = vrsqrt.f32 %v987_v20  ;;  %v933_v59 = vmul.f32 0.020408163, %v821_v58  ;;  %v1146_v58 = vmul.f32 %v2762_v3, %v1090_v12  ;;  %v1094_v12 = vld [vmem:[%s3617_s6 + $0xa0] sm:$0xff] }
 0x178   : > { %1339 = vperm.xlu0 %2723, %v1149_v60   ;;  %1304 = vperm.xlu1 %2724, %v1142_v46   ;;  %2773 = vrsqrt.f32 %v984_v6  ;;  %v988_v6 = vadd.f32 1e-05, %v932_v10 }
 0x179   : > { %v2764_v34 = vpop.eup %2763  ;;  %v989_v30 = vadd.f32 1e-05, %v933_v59 }
 0x17a   : > { %v827_v27 = vpop.xlane.xlu1 %826  ;;  %v1151_v16 = vmul.f32 %v2764_v34, %v1095_v51  ;;  %v2766_v20 = vpop.eup %2765  ;;  %v934_v51 = vmul.f32 0.020408163, %v824_v7  ;;  %v1099_v34 = vld [vmem:[%s3617_s6 + $0xc8] sm:$0xff] }
 0x17b   : > { %v830_v26 = vpop.xlane.xlu0 %829  ;;  %2775 = vrsqrt.f32 %v989_v30  ;;  %v935_v55 = vmul.f32 0.020408163, %v827_v27  ;;  %v1148_v27 = vmul.f32 %v2766_v20, %v1092_v35  ;;  %v1096_v35 = vld [vmem:[%s3617_s6 + $0xb0] sm:$0xff] }
 0x17c   : > { %1349 = vperm.xlu0 %2723, %v1151_v16   ;;  %1314 = vperm.xlu1 %2724, %v1144_v56   ;;  %2777 = vrsqrt.f32 %v986_v43  ;;  %v990_v43 = vadd.f32 1e-05, %v934_v51 }
 0x17d   : > { %v2768_v46 = vpop.eup %2767  ;;  %v991_v50 = vadd.f32 1e-05, %v935_v55 }
 0x17e   : > { %v833_v60 = vpop.xlane.xlu1 %832  ;;  %v1153_v59 = vmul.f32 %v2768_v46, %v1097_v52  ;;  %v2770_v30 = vpop.eup %2769  ;;  %v936_v52 = vmul.f32 0.020408163, %v830_v26  ;;  %v1101_v46 = vld [vmem:[%s3617_s6 + $0xd8] sm:$0xff] }
 0x17f   : > { %v836_v42 = vpop.xlane.xlu0 %835  ;;  %2779 = vrsqrt.f32 %v991_v50  ;;  %v937_v18 = vmul.f32 0.020408163, %v833_v60  ;;  %v1150_v60 = vmul.f32 %v2770_v30, %v1094_v12  ;;  %v1098_v12 = vld [vmem:[%s3617_s6 + $0xc0] sm:$0xff] }
 0x180   : > { %1359 = vperm.xlu0 %2723, %v1153_v59   ;;  %1324 = vperm.xlu1 %2724, %v1146_v58   ;;  %2781 = vrsqrt.f32 %v988_v6  ;;  %v992_v6 = vadd.f32 1e-05, %v936_v52 }
 0x181   : > { %v2772_v56 = vpop.eup %2771  ;;  %v993_v3 = vadd.f32 1e-05, %v937_v18 }
 0x182   : > { %v839_v16 = vpop.xlane.xlu1 %838  ;;  %v1155_v55 = vmul.f32 %v2772_v56, %v1099_v34  ;;  %v2774_v50 = vpop.eup %2773  ;;  %v938_v34 = vmul.f32 0.020408163, %v836_v42  ;;  %v1103_v56 = vld [vmem:[%s3617_s6 + $0xe8] sm:$0xff] }
 0x183   : > { %v842_v10 = vpop.xlane.xlu0 %841  ;;  %2783 = vrsqrt.f32 %v993_v3  ;;  %v939_v7 = vmul.f32 0.020408163, %v839_v16  ;;  %v1152_v16 = vmul.f32 %v2774_v50, %v1096_v35  ;;  %v1100_v35 = vld [vmem:[%s3617_s6 + $0xd0] sm:$0xff] }
 0x184   : > { %1369 = vperm.xlu0 %2723, %v1155_v55   ;;  %1334 = vperm.xlu1 %2724, %v1148_v27   ;;  %2785 = vrsqrt.f32 %v990_v43  ;;  %v994_v43 = vadd.f32 1e-05, %v938_v34 }
 0x185   : > { %v2776_v58 = vpop.eup %2775  ;;  %v995_v20 = vadd.f32 1e-05, %v939_v7 }
 0x186   : > { %v845_v59 = vpop.xlane.xlu1 %844  ;;  %v1157_v18 = vmul.f32 %v2776_v58, %v1101_v46  ;;  %v2778_v3 = vpop.eup %2777  ;;  %v940_v46 = vmul.f32 0.020408163, %v842_v10  ;;  %v1105_v58 = vld [vmem:[%s3617_s6 + $0xf8] sm:$0xff] }
 0x187   : > { %v848_v51 = vpop.xlane.xlu0 %847  ;;  %2787 = vrsqrt.f32 %v995_v20  ;;  %v941_v26 = vmul.f32 0.020408163, %v845_v59  ;;  %v1154_v59 = vmul.f32 %v2778_v3, %v1098_v12  ;;  %v1102_v12 = vld [vmem:[%s3617_s6 + $0xe0] sm:$0xff] }
 0x188   : > { %1379 = vperm.xlu0 %2723, %v1157_v18   ;;  %1344 = vperm.xlu1 %2724, %v1150_v60   ;;  %2789 = vrsqrt.f32 %v992_v6  ;;  %v996_v6 = vadd.f32 1e-05, %v940_v46 }
 0x189   : > { %v2780_v27 = vpop.eup %2779  ;;  %v997_v30 = vadd.f32 1e-05, %v941_v26 }
 0x18a   : > { %v851_v55 = vpop.xlane.xlu1 %850  ;;  %v1159_v7 = vmul.f32 %v2780_v27, %v1103_v56  ;;  %v2782_v20 = vpop.eup %2781  ;;  %v942_v56 = vmul.f32 0.020408163, %v848_v51  ;;  %v1107_v27 = vld [vmem:[%s3617_s6 + $0x108] sm:$0xff] }
 0x18b   : > { %v854_v52 = vpop.xlane.xlu0 %853  ;;  %2791 = vrsqrt.f32 %v997_v30  ;;  %v943_v42 = vmul.f32 0.020408163, %v851_v55  ;;  %v1156_v55 = vmul.f32 %v2782_v20, %v1100_v35  ;;  %v1104_v35 = vld [vmem:[%s3617_s6 + $0xf0] sm:$0xff] }
 0x18c   : > { %1389 = vperm.xlu0 %2723, %v1159_v7   ;;  %1354 = vperm.xlu1 %2724, %v1152_v16   ;;  %2793 = vrsqrt.f32 %v994_v43  ;;  %v998_v43 = vadd.f32 1e-05, %v942_v56 }
 0x18d   : > { %v2784_v60 = vpop.eup %2783  ;;  %v999_v50 = vadd.f32 1e-05, %v943_v42 }
 0x18e   : > { %v857_v18 = vpop.xlane.xlu1 %856  ;;  %v1161_v26 = vmul.f32 %v2784_v60, %v1105_v58  ;;  %v2786_v30 = vpop.eup %2785  ;;  %v944_v58 = vmul.f32 0.020408163, %v854_v52  ;;  %v1109_v60 = vld [vmem:[%s3617_s6 + $0x118] sm:$0xff] }
 0x18f   : > { %v860_v34 = vpop.xlane.xlu0 %859  ;;  %2795 = vrsqrt.f32 %v999_v50  ;;  %v945_v10 = vmul.f32 0.020408163, %v857_v18  ;;  %v1158_v18 = vmul.f32 %v2786_v30, %v1102_v12  ;;  %v1106_v12 = vld [vmem:[%s3617_s6 + $0x100] sm:$0xff] }
 0x190   : > { %1399 = vperm.xlu0 %2723, %v1161_v26   ;;  %1364 = vperm.xlu1 %2724, %v1154_v59   ;;  %2797 = vrsqrt.f32 %v996_v6  ;;  %v1000_v6 = vadd.f32 1e-05, %v944_v58 }
 0x191   : > { %v2788_v16 = vpop.eup %2787  ;;  %v1001_v3 = vadd.f32 1e-05, %v945_v10 }
 0x192   : > { %v863_v7 = vpop.xlane.xlu1 %862  ;;  %v1163_v42 = vmul.f32 %v2788_v16, %v1107_v27  ;;  %v2790_v50 = vpop.eup %2789  ;;  %v946_v27 = vmul.f32 0.020408163, %v860_v34  ;;  %v1111_v16 = vld [vmem:[%s3617_s6 + $0x128] sm:$0xff] }
 0x193   : > { %v866_v46 = vpop.xlane.xlu0 %865  ;;  %2799 = vrsqrt.f32 %v1001_v3  ;;  %v947_v51 = vmul.f32 0.020408163, %v863_v7  ;;  %v1160_v7 = vmul.f32 %v2790_v50, %v1104_v35  ;;  %v1108_v35 = vld [vmem:[%s3617_s6 + $0x110] sm:$0xff] }
 0x194   : > { %1409 = vperm.xlu0 %2723, %v1163_v42   ;;  %1374 = vperm.xlu1 %2724, %v1156_v55   ;;  %2801 = vrsqrt.f32 %v998_v43  ;;  %v1002_v43 = vadd.f32 1e-05, %v946_v27 }
 0x195   : > { %v2792_v59 = vpop.eup %2791  ;;  %v1003_v20 = vadd.f32 1e-05, %v947_v51 }
 0x196   : > { %v869_v26 = vpop.xlane.xlu1 %868  ;;  %v1165_v10 = vmul.f32 %v2792_v59, %v1109_v60  ;;  %v2794_v3 = vpop.eup %2793  ;;  %v948_v60 = vmul.f32 0.020408163, %v866_v46  ;;  %v1113_v59 = vld [vmem:[%s3617_s6 + $0x138] sm:$0xff] }
 0x197   : > { %v872_v56 = vpop.xlane.xlu0 %871  ;;  %2803 = vrsqrt.f32 %v1003_v20  ;;  %v949_v52 = vmul.f32 0.020408163, %v869_v26  ;;  %v1162_v26 = vmul.f32 %v2794_v3, %v1106_v12  ;;  %v1110_v12 = vld [vmem:[%s3617_s6 + $0x120] sm:$0xff] }
 0x198   : > { %1419 = vperm.xlu0 %2723, %v1165_v10   ;;  %1384 = vperm.xlu1 %2724, %v1158_v18   ;;  %2805 = vrsqrt.f32 %v1000_v6  ;;  %v1004_v6 = vadd.f32 1e-05, %v948_v60  ;;  %v1117_v60 = vld [vmem:[%s3617_s6 + $0x158] sm:$0xff] }
 0x199   : > { %v2796_v55 = vpop.eup %2795  ;;  %v1005_v30 = vadd.f32 1e-05, %v949_v52 }
 0x19a   : > { %v875_v42 = vpop.xlane.xlu1 %874  ;;  %v1167_v51 = vmul.f32 %v2796_v55, %v1111_v16  ;;  %v2798_v20 = vpop.eup %2797  ;;  %v950_v16 = vmul.f32 0.020408163, %v872_v56  ;;  %v1115_v55 = vld [vmem:[%s3617_s6 + $0x148] sm:$0xff] }
 0x19b   : > { %v878_v58 = vpop.xlane.xlu0 %877  ;;  %2807 = vrsqrt.f32 %v1005_v30  ;;  %v951_v34 = vmul.f32 0.020408163, %v875_v42  ;;  %v1164_v42 = vmul.f32 %v2798_v20, %v1108_v35  ;;  %v1112_v35 = vld [vmem:[%s3617_s6 + $0x130] sm:$0xff] }
 0x19c   : > { %1429 = vperm.xlu0 %2723, %v1167_v51   ;;  %1394 = vperm.xlu1 %2724, %v1160_v7   ;;  %2809 = vrsqrt.f32 %v1002_v43  ;;  %v1006_v43 = vadd.f32 1e-05, %v950_v16  ;;  %v1119_v16 = vld [vmem:[%s3617_s6 + $0x168] sm:$0xff] }
 0x19d   : > { %v2800_v18 = vpop.eup %2799  ;;  %v1007_v50 = vadd.f32 1e-05, %v951_v34 }
 0x19e   : > { %v881_v10 = vpop.xlane.xlu1 %880  ;;  %v1169_v52 = vmul.f32 %v2800_v18, %v1113_v59  ;;  %v2802_v30 = vpop.eup %2801  ;;  %v952_v59 = vmul.f32 0.020408163, %v878_v58 }
 0x19f   : > { %v884_v27 = vpop.xlane.xlu0 %883  ;;  %2811 = vrsqrt.f32 %v1007_v50  ;;  %v953_v46 = vmul.f32 0.020408163, %v881_v10  ;;  %v1166_v50 = vmul.f32 %v2802_v30, %v1110_v12  ;;  %v1114_v12 = vld [vmem:[%s3617_s6 + $0x140] sm:$0xff] }
 0x1a0   : > { %1439 = vperm.xlu0 %2723, %v1169_v52   ;;  %1404 = vperm.xlu1 %2724, %v1162_v26   ;;  %2813 = vrsqrt.f32 %v1004_v6  ;;  %v1008_v6 = vadd.f32 1e-05, %v952_v59  ;;  %v1121_v59 = vld [vmem:[%s3617_s6 + $0x178] sm:$0xff] }
 0x1a1   : > { %v2804_v7 = vpop.eup %2803  ;;  %v1009_v3 = vadd.f32 1e-05, %v953_v46 }
 0x1a2   : > { %v887_v51 = vpop.xlane.xlu1 %886  ;;  %v1171_v34 = vmul.f32 %v2804_v7, %v1115_v55  ;;  %v2806_v18 = vpop.eup %2805  ;;  %v954_v55 = vmul.f32 0.020408163, %v884_v27 }
 0x1a3   : > { %2815 = vrsqrt.f32 %v1009_v3  ;;  %v955_v56 = vmul.f32 0.020408163, %v887_v51  ;;  %v890_v10 = vpop.xlane.xlu0 %889  ;;  %v1168_v3 = vmul.f32 %v2806_v18, %v1112_v35  ;;  %v1116_v35 = vld [vmem:[%s3617_s6 + $0x150] sm:$0xff] }
 0x1a4   : > { %1449 = vperm.xlu0 %2723, %v1171_v34   ;;  %1414 = vperm.xlu1 %2724, %v1164_v42   ;;  %2817 = vrsqrt.f32 %v1006_v43  ;;  %v956_v43 = vmul.f32 0.020408163, %v890_v10 }
 0x1a5   : > { %v2808_v26 = vpop.eup %2807  ;;  %v1011_v20 = vadd.f32 1e-05, %v955_v56  ;;  %v1010_v56 = vadd.f32 1e-05, %v954_v55  ;;  %v1123_v55 = vld [vmem:[%s3617_s6 + $0x188] sm:$0xff] }
 0x1a6   : > { %v893_v52 = vpop.xlane.xlu1 %892  ;;  %v1173_v46 = vmul.f32 %v2808_v26, %v1117_v60  ;;  %v2810_v7 = vpop.eup %2809 }
 0x1a7   : > { %2819 = vrsqrt.f32 %v1011_v20  ;;  %v957_v58 = vmul.f32 0.020408163, %v893_v52  ;;  %v896_v60 = vpop.xlane.xlu0 %895  ;;  %v1170_v20 = vmul.f32 %v2810_v7, %v1114_v12  ;;  %v1118_v12 = vld [vmem:[%s3617_s6 + $0x160] sm:$0xff] }
 0x1a8   : > { %1459 = vperm.xlu0 %2723, %v1173_v46   ;;  %1424 = vperm.xlu1 %2724, %v1166_v50   ;;  %2821 = vrsqrt.f32 %v1008_v6  ;;  %v1012_v6 = vadd.f32 1e-05, %v956_v43 }
 0x1a9   : > { %v2812_v42 = vpop.eup %2811  ;;  %v1013_v30 = vadd.f32 1e-05, %v957_v58  ;;  %v958_v58 = vmul.f32 0.020408163, %v896_v60 }
 0x1aa   : > { %v899_v51 = vpop.xlane.xlu1 %898  ;;  %v1175_v34 = vmul.f32 %v2812_v42, %v1119_v16  ;;  %v2814_v26 = vpop.eup %2813 }
 0x1ab   : > { %2823 = vrsqrt.f32 %v1013_v30  ;;  %v959_v27 = vmul.f32 0.020408163, %v899_v51  ;;  %v1172_v42 = vmul.f32 %v2814_v26, %v1116_v35  ;;  %v1120_v26 = vld [vmem:[%s3617_s6 + $0x170] sm:$0xff] }
 0x1ac   : > { %1469 = vperm.xlu0 %2723, %v1175_v34   ;;  %1434 = vperm.xlu1 %2724, %v1168_v3   ;;  %2825 = vrsqrt.f32 %v1010_v56  ;;  %v902_v3 = vpop.xlane.xlu0 %901  ;;  %v1014_v34 = vadd.f32 1e-05, %v958_v58  ;;  %v1125_v56 = vld [vmem:[%s3617_s6 + $0x198] sm:$0xff] }
 0x1ad   : > { %v2816_v50 = vpop.eup %2815  ;;  %v1015_v18 = vadd.f32 1e-05, %v959_v27  ;;  %v960_v43 = vmul.f32 0.020408163, %v902_v3  ;;  %v1124_v3 = vld [vmem:[%s3617_s6 + $0x190] sm:$0xff] }
 0x1ae   : > { %v905_v52 = vpop.xlane.xlu1 %904  ;;  %v1177_v46 = vmul.f32 %v2816_v50, %v1121_v59  ;;  %v2818_v16 = vpop.eup %2817 }
 0x1af   : > { %2827 = vrsqrt.f32 %v1015_v18  ;;  %v961_v10 = vmul.f32 0.020408163, %v905_v52  ;;  %v1174_v60 = vmul.f32 %v2818_v16, %v1118_v12  ;;  %v1016_v50 = vadd.f32 1e-05, %v960_v43  ;;  %v1127_v18 = vld [vmem:[%s3617_s6 + $0x1a8] sm:$0xff] }
 0x1b0   : > { %1479 = vperm.xlu0 %2723, %v1177_v46   ;;  %1444 = vperm.xlu1 %2724, %v1170_v20   ;;  %2829 = vrsqrt.f32 %v1012_v6  ;;  %v1122_v6 = vld [vmem:[%s3617_s6 + $0x180] sm:$0xff] }
 0x1b1   : > { %v2820_v7 = vpop.eup %2819  ;;  %v1017_v30 = vadd.f32 1e-05, %v961_v10 }
 0x1b2   : > { %v1179_v51 = vmul.f32 %v2820_v7, %v1123_v55  ;;  %v2822_v27 = vpop.eup %2821  ;;  %v1129_v55 = vld [vmem:[%s3617_s6 + $0x1b8] sm:$0xff] }
 0x1b3   : > { %2831 = vrsqrt.f32 %v1017_v30  ;;  %v1176_v52 = vmul.f32 %v2822_v27, %v1120_v26  ;;  %v1637_v27 = vld [vmem:[%s3677_s9 + $0x18] sm:$0xff]  ;;  %v1639_v26 = vld [vmem:[%s3677_s9 + $0x28] sm:$0xff] }
 0x1b4   : > { %1489 = vperm.xlu0 %2723, %v1179_v51   ;;  %1454 = vperm.xlu1 %2724, %v1172_v42   ;;  %2833 = vrsqrt.f32 %v1014_v34  ;;  %v1635_v51 = vld [vmem:[%s3677_s9 + $0x8] sm:$0xff]  ;;  %v1126_v34 = vld [vmem:[%s3617_s6 + $0x1a0] sm:$0xff] }
 0x1b5   : > { %v2824_v59 = vpop.eup %2823  ;;  %2835 = vrsqrt.f32 %v1016_v50  ;;  %v1634_v50 = vld [vmem:[%s3677_s9] sm:$0xff] }
 0x1b6   : > { %v1181_v20 = vmul.f32 %v2824_v59, %v1125_v56  ;;  %v2826_v35 = vpop.eup %2825 }
 0x1b7   : > { %v1178_v16 = vmul.f32 %v2826_v35, %v1122_v6  ;;  %v1636_v35 = vld [vmem:[%s3677_s9 + $0x10] sm:$0xff]  ;;  %v1638_v6 = vld [vmem:[%s3677_s9 + $0x20] sm:$0xff] }
 0x1b8   : > { %1499 = vperm.xlu0 %2723, %v1181_v20   ;;  %1464 = vperm.xlu1 %2724, %v1174_v60   ;;  %v1128_v60 = vld [vmem:[%s3617_s6 + $0x1b0] sm:$0xff]  ;;  %v1641_v20 = vld [vmem:[%s3677_s9 + $0x38] sm:$0xff] }
 0x1b9   : > { %v2828_v46 = vpop.eup %2827 }
 0x1ba   : > { %v1183_v10 = vmul.f32 %v2828_v46, %v1127_v18  ;;  %v2830_v58 = vpop.eup %2829  ;;  %v1643_v18 = vld [vmem:[%s3677_s9 + $0x48] sm:$0xff]  ;;  %v1645_v46 = vld [vmem:[%s3677_s9 + $0x58] sm:$0xff] }
 0x1bb   : > { %v1180_v30 = vmul.f32 %v2830_v58, %v1124_v3  ;;  %v1640_v58 = vld [vmem:[%s3677_s9 + $0x30] sm:$0xff]  ;;  %v1642_v3 = vld [vmem:[%s3677_s9 + $0x40] sm:$0xff] }
 0x1bc   : > { %1509 = vperm.xlu0 %2723, %v1183_v10   ;;  %1474 = vperm.xlu1 %2724, %v1176_v52  }
 0x1bd   : > { %v2832_v42 = vpop.eup %2831 }
 0x1be   : > { %v1185_v7 = vmul.f32 %v2832_v42, %v1129_v55  ;;  %v2834_v12 = vpop.eup %2833  ;;  %v1647_v55 = vld [vmem:[%s3677_s9 + $0x68] sm:$0xff]  ;;  %v1649_v42 = vld [vmem:[%s3677_s9 + $0x78] sm:$0xff] }
 0x1bf   : > { %v1182_v56 = vmul.f32 %v2834_v12, %v1126_v34  ;;  %v2836_v43 = vpop.eup %2835  ;;  %v1651_v12 = vld [vmem:[%s3677_s9 + $0x88] sm:$0xff] }
 0x1c0   : > { %1519 = vperm.xlu0 %2723, %v1185_v7   ;;  %1484 = vperm.xlu1 %2724, %v1178_v16   ;;  %v1184_v59 = vmul.f32 %v2836_v43, %v1128_v60  ;;  %v1653_v43 = vld [vmem:[%s3677_s9 + $0x98] sm:$0xff] }
 0x1c4   : > { %1697 = vperm.xlu0 %2723, %v1635_v51   ;;  %1494 = vperm.xlu1 %2724, %v1180_v30   ;;  %v1644_v51 = vld [vmem:[%s3677_s9 + $0x50] sm:$0xff] }
 0x1c8   : > { %1707 = vperm.xlu0 %2723, %v1637_v27   ;;  %1504 = vperm.xlu1 %2724, %v1182_v56   ;;  %v1646_v27 = vld [vmem:[%s3677_s9 + $0x60] sm:$0xff] }
 0x1cc   : > { %1717 = vperm.xlu0 %2723, %v1639_v26   ;;  %1514 = vperm.xlu1 %2724, %v1184_v59   ;;  %v1655_v26 = vld [vmem:[%s3677_s9 + $0xa8] sm:$0xff] }
 0x1cf   : > { %v3700_v7 = vpop.permute.xlu0 %1244 }
 0x1d0   : > { %1727 = vperm.xlu0 %2723, %v1641_v20   ;;  %1692 = vperm.xlu1 %2724, %v1634_v50   ;;  %v1648_v20 = vld [vmem:[%s3677_s9 + $0x70] sm:$0xff] }
 0x1d3   : > { %v3688_v52 = vpop.permute.xlu1 %1249 }
 0x1d4   : > { %1737 = vperm.xlu0 %2723, %v1643_v18   ;;  %1702 = vperm.xlu1 %2724, %v1636_v35   ;;  %v1657_v35 = vld [vmem:[%s3677_s9 + $0xb8] sm:$0xff] }
 0x1d7   : > { %v3692_v10 = vpop.permute.xlu1 %1254 }
 0x1d8   : > { %1747 = vperm.xlu0 %2723, %v1645_v46   ;;  %1712 = vperm.xlu1 %2724, %v1638_v6   ;;  %v1650_v46 = vld [vmem:[%s3677_s9 + $0x80] sm:$0xff] }
 0x1db   : > { %v3696_v16 = vpop.permute.xlu1 %1259 }
 0x1dc   : > { %1757 = vperm.xlu0 %2723, %v1647_v55   ;;  %1722 = vperm.xlu1 %2724, %v1640_v58   ;;  %v1659_v58 = vld [vmem:[%s3677_s9 + $0xc8] sm:$0xff] }
 0x1df   : > { %v3702_v30 = vpop.permute.xlu1 %1264 }
 0x1e0   : > { %1767 = vperm.xlu0 %2723, %v1649_v42   ;;  %1732 = vperm.xlu1 %2724, %v1642_v3   ;;  %v1652_v42 = vld [vmem:[%s3677_s9 + $0x90] sm:$0xff] }
 0x1e3   : > { %v3706_v34 = vpop.permute.xlu1 %1269  ;;  %v3708_v56 = vpop.permute.xlu0 %1289 }
 0x1e4   : > { %1777 = vperm.xlu0 %2723, %v1651_v12   ;;  %1742 = vperm.xlu1 %2724, %v1644_v51   ;;  %v1661_v51 = vld [vmem:[%s3677_s9 + $0xd8] sm:$0xff] }
 0x1e7   : > { %v3712_v60 = vpop.permute.xlu1 %1274  ;;  %v3714_v59 = vpop.permute.xlu0 %1299 }
 0x1e8   : > { %1787 = vperm.xlu0 %2723, %v1653_v43   ;;  %1752 = vperm.xlu1 %2724, %v1646_v27   ;;  %v1654_v43 = vld [vmem:[%s3677_s9 + $0xa0] sm:$0xff] }
 0x1eb   : > { %v3718_v50 = vpop.permute.xlu1 %1279  ;;  %v3720_v18 = vpop.permute.xlu0 %1309 }
 0x1ec   : > { %1797 = vperm.xlu0 %2723, %v1655_v26   ;;  %1762 = vperm.xlu1 %2724, %v1648_v20   ;;  %v1663_v20 = vld [vmem:[%s3677_s9 + $0xe8] sm:$0xff] }
 0x1ef   : > { %v3724_v6 = vpop.permute.xlu1 %1284  ;;  %v3726_v55 = vpop.permute.xlu0 %1319 }
 0x1f0   : > { %1807 = vperm.xlu0 %2723, %v1657_v35   ;;  %1772 = vperm.xlu1 %2724, %v1650_v46   ;;  %v1656_v35 = vld [vmem:[%s3677_s9 + $0xb0] sm:$0xff] }
 0x1f3   : > { %v3730_v3 = vpop.permute.xlu1 %1294  ;;  %v3732_v12 = vpop.permute.xlu0 %1329 }
 0x1f4   : > { %1817 = vperm.xlu0 %2723, %v1659_v58   ;;  %1782 = vperm.xlu1 %2724, %v1652_v42   ;;  %v1665_v58 = vld [vmem:[%s3677_s9 + $0xf8] sm:$0xff]  ;;  %v1658_v42 = vld [vmem:[%s3677_s9 + $0xc0] sm:$0xff] }
 0x1f7   : > { %v3736_v27 = vpop.permute.xlu1 %1304  ;;  %v3738_v26 = vpop.permute.xlu0 %1339 }
 0x1f8   : > { %1827 = vperm.xlu0 %2723, %v1661_v51   ;;  %1792 = vperm.xlu1 %2724, %v1654_v43   ;;  %v1667_v51 = vld [vmem:[%s3677_s9 + $0x108] sm:$0xff]  ;;  %v1660_v43 = vld [vmem:[%s3677_s9 + $0xd0] sm:$0xff] }
 0x1fb   : > { %v3742_v46 = vpop.permute.xlu1 %1314  ;;  %v3744_v19 = vpop.permute.xlu0 %1349 }
 0x1fc   : > { %1837 = vperm.xlu0 %2723, %v1663_v20   ;;  %1802 = vperm.xlu1 %2724, %v1656_v35   ;;  %v1669_v20 = vld [vmem:[%s3677_s9 + $0x118] sm:$0xff]  ;;  %v1662_v35 = vld [vmem:[%s3677_s9 + $0xe0] sm:$0xff] }
 0x1ff   : > { %v3748_v48 = vpop.permute.xlu1 %1324  ;;  %v3750_v11 = vpop.permute.xlu0 %1359 }
 0x200   : > { %1847 = vperm.xlu0 %2723, %v1665_v58   ;;  %1812 = vperm.xlu1 %2724, %v1658_v42   ;;  %v1671_v58 = vld [vmem:[%s3677_s9 + $0x128] sm:$0xff]  ;;  %v1664_v42 = vld [vmem:[%s3677_s9 + $0xf0] sm:$0xff] }
 0x203   : > { %v3754_v44 = vpop.permute.xlu1 %1334  ;;  %v3756_v4 = vpop.permute.xlu0 %1369 }
 0x204   : > { %1857 = vperm.xlu0 %2723, %v1667_v51   ;;  %1822 = vperm.xlu1 %2724, %v1660_v43   ;;  %v1673_v51 = vld [vmem:[%s3677_s9 + $0x138] sm:$0xff]  ;;  %v1666_v43 = vld [vmem:[%s3677_s9 + $0x100] sm:$0xff] }
 0x207   : > { %v3760_v40 = vpop.permute.xlu1 %1344  ;;  %v3762_v61 = vpop.permute.xlu0 %1379 }
 0x208   : > { %1867 = vperm.xlu0 %2723, %v1669_v20   ;;  %1832 = vperm.xlu1 %2724, %v1662_v35   ;;  %v1675_v20 = vld [vmem:[%s3677_s9 + $0x148] sm:$0xff]  ;;  %v1668_v35 = vld [vmem:[%s3677_s9 + $0x110] sm:$0xff] }
 0x20b   : > { %v3766_v37 = vpop.permute.xlu1 %1354  ;;  %v3768_v57 = vpop.permute.xlu0 %1389 }
 0x20c   : > { %1877 = vperm.xlu0 %2723, %v1671_v58   ;;  %1842 = vperm.xlu1 %2724, %v1664_v42   ;;  %v1677_v58 = vld [vmem:[%s3677_s9 + $0x158] sm:$0xff]  ;;  %v1670_v42 = vld [vmem:[%s3677_s9 + $0x120] sm:$0xff] }
 0x20f   : > { %v3772_v13 = vpop.permute.xlu1 %1364  ;;  %v3774_v53 = vpop.permute.xlu0 %1399 }
 0x210   : > { %4406 = vst [vmem:[#allocation34_spill] sm:$0xff] %v3772_v13  ;;  %4407 = vst [vmem:[#allocation35_spill] sm:$0xff] %v3774_v53  ;;  %1887 = vperm.xlu0 %2723, %v1673_v51   ;;  %1852 = vperm.xlu1 %2724, %v1666_v43   ;;  %v1679_v51 = vld [vmem:[%s3677_s9 + $0x168] sm:$0xff]  ;;  %v1672_v43 = vld [vmem:[%s3677_s9 + $0x130] sm:$0xff] }
 0x213   : > { %v3778_v9 = vpop.permute.xlu1 %1374  ;;  %v3780_v49 = vpop.permute.xlu0 %1409 }
 0x214   : > { %4408 = vst [vmem:[#allocation36_spill] sm:$0xff] %v3778_v9  ;;  %4409 = vst [vmem:[#allocation37_spill] sm:$0xff] %v3780_v49  ;;  %1897 = vperm.xlu0 %2723, %v1675_v20   ;;  %1862 = vperm.xlu1 %2724, %v1668_v35   ;;  %v1674_v20 = vld [vmem:[%s3677_s9 + $0x140] sm:$0xff]  ;;  %v1681_v35 = vld [vmem:[%s3677_s9 + $0x178] sm:$0xff] }
 0x217   : > { %v3784_v23 = vpop.permute.xlu1 %1384  ;;  %v3786_v13 = vpop.permute.xlu0 %1419 }
 0x218   : > { %4410 = vst [vmem:[#allocation38_spill] sm:$0xff] %v3784_v23  ;;  %4411 = vst [vmem:[#allocation39_spill] sm:$0xff] %v3786_v13  ;;  %1907 = vperm.xlu0 %2723, %v1677_v58   ;;  %1872 = vperm.xlu1 %2724, %v1670_v42   ;;  %v1676_v58 = vld [vmem:[%s3677_s9 + $0x150] sm:$0xff]  ;;  %v1683_v42 = vld [vmem:[%s3677_s9 + $0x188] sm:$0xff] }
 0x21b   : > { %v3790_v53 = vpop.permute.xlu1 %1394  ;;  %v3792_v9 = vpop.permute.xlu0 %1429 }
 0x21c   : > { %4412 = vst [vmem:[#allocation40_spill] sm:$0xff] %v3790_v53  ;;  %4413 = vst [vmem:[#allocation41_spill] sm:$0xff] %v3792_v9  ;;  %1917 = vperm.xlu0 %2723, %v1679_v51   ;;  %1882 = vperm.xlu1 %2724, %v1672_v43   ;;  %v1678_v51 = vld [vmem:[%s3677_s9 + $0x160] sm:$0xff]  ;;  %v1685_v43 = vld [vmem:[%s3677_s9 + $0x198] sm:$0xff] }
 0x21f   : > { %v3796_v49 = vpop.permute.xlu1 %1404  ;;  %v3798_v23 = vpop.permute.xlu0 %1439 }
 0x220   : > { %4414 = vst [vmem:[#allocation42_spill] sm:$0xff] %v3796_v49  ;;  %4415 = vst [vmem:[#allocation43_spill] sm:$0xff] %v3798_v23  ;;  %1892 = vperm.xlu1 %2724, %v1674_v20   ;;  %1927 = vperm.xlu0 %2723, %v1681_v35   ;;  %v1680_v20 = vld [vmem:[%s3677_s9 + $0x170] sm:$0xff]  ;;  %v1687_v35 = vld [vmem:[%s3677_s9 + $0x1a8] sm:$0xff] }
 0x223   : > { %v3802_v13 = vpop.permute.xlu1 %1414  ;;  %v3804_v53 = vpop.permute.xlu0 %1449 }
 0x224   : > { %4416 = vst [vmem:[#allocation44_spill] sm:$0xff] %v3802_v13  ;;  %4417 = vst [vmem:[#allocation45_spill] sm:$0xff] %v3804_v53  ;;  %1902 = vperm.xlu1 %2724, %v1676_v58   ;;  %1937 = vperm.xlu0 %2723, %v1683_v42   ;;  %v1682_v58 = vld [vmem:[%s3677_s9 + $0x180] sm:$0xff]  ;;  %v1689_v42 = vld [vmem:[%s3677_s9 + $0x1b8] sm:$0xff] }
 0x227   : > { %v3808_v9 = vpop.permute.xlu1 %1424  ;;  %v3810_v49 = vpop.permute.xlu0 %1459 }
 0x228   : > { %4418 = vst [vmem:[#allocation46_spill] sm:$0xff] %v3808_v9  ;;  %4419 = vst [vmem:[#allocation47_spill] sm:$0xff] %v3810_v49  ;;  %1912 = vperm.xlu1 %2724, %v1678_v51   ;;  %1947 = vperm.xlu0 %2723, %v1685_v43   ;;  %v1684_v51 = vld [vmem:[%s3677_s9 + $0x190] sm:$0xff] }
 0x22b   : > { %v3814_v23 = vpop.permute.xlu1 %1434  ;;  %v3816_v13 = vpop.permute.xlu0 %1469 }
 0x22c   : > { %4420 = vst [vmem:[#allocation48_spill] sm:$0xff] %v3814_v23  ;;  %4421 = vst [vmem:[#allocation49_spill] sm:$0xff] %v3816_v13  ;;  %1922 = vperm.xlu1 %2724, %v1680_v20   ;;  %1957 = vperm.xlu0 %2723, %v1687_v35   ;;  %v1686_v13 = vld [vmem:[%s3677_s9 + $0x1a0] sm:$0xff]  ;;  %v1688_v23 = vld [vmem:[%s3677_s9 + $0x1b0] sm:$0xff] }
 0x22f   : > { %v3820_v53 = vpop.permute.xlu1 %1444  ;;  %v3822_v9 = vpop.permute.xlu0 %1479 }
 0x230   : > { %4422 = vst [vmem:[#allocation50_spill] sm:$0xff] %v3820_v53  ;;  %4423 = vst [vmem:[#allocation51_spill] sm:$0xff] %v3822_v9  ;;  %1932 = vperm.xlu1 %2724, %v1682_v58   ;;  %1967 = vperm.xlu0 %2723, %v1689_v42   ;;  %v1523_v58 = vmul.f32 %v3688_v52, %v3288_v63 }
 0x233   : > { %v3825_v43 = vpop.permute.xlu1 %1454  ;;  %v3827_v49 = vpop.permute.xlu0 %1489 }
 0x234   : > { %4424 = vst [vmem:[#allocation52_spill] sm:$0xff] %v3825_v43  ;;  %4425 = vst [vmem:[#allocation53_spill] sm:$0xff] %v3827_v49  ;;  %1942 = vperm.xlu1 %2724, %v1684_v51   ;;  %v1187_v51 = vld [vmem:[%s3845_s12 + $0x8] sm:$0xff] }
 0x237   : > { %v3830_v20 = vpop.permute.xlu1 %1464  ;;  %v3832_v35 = vpop.permute.xlu0 %1499 }
 0x238   : > { %4426 = vst [vmem:[#allocation54_spill] sm:$0xff] %v3830_v20  ;;  %4427 = vst [vmem:[#allocation55_spill] sm:$0xff] %v3832_v35  ;;  %1952 = vperm.xlu1 %2724, %v1686_v13   ;;  %v1527_v20 = vmul.f32 %v3706_v34, %v3300_v2  ;;  %v1529_v2 = vmul.f32 %v3718_v50, %v3312_v31 }
 0x23b   : > { %v3835_v53 = vpop.permute.xlu1 %1474  ;;  %v3837_v9 = vpop.permute.xlu0 %1509 }
 0x23c   : > { %4428 = vst [vmem:[#allocation56_spill] sm:$0xff] %v3835_v53  ;;  %4429 = vst [vmem:[#allocation57_spill] sm:$0xff] %v3837_v9  ;;  %1962 = vperm.xlu1 %2724, %v1688_v23   ;;  %v1525_v23 = vmul.f32 %v3696_v16, %v3291_v14  ;;  %v1579_v9 = vadd.f32 %v1523_v58, %v1187_v51  ;;  %v1189_v53 = vld [vmem:[%s3845_s12 + $0x18] sm:$0xff]  ;;  %v1186_v58 = vld [vmem:[%s3845_s12] sm:$0xff] }
 0x23d   : > { %v1193_v51 = vld [vmem:[%s3845_s12 + $0x38] sm:$0xff] }
 0x23e   : > { %v1585_v50 = vadd.f32 %v1529_v2, %v1193_v51 }
 0x23f   : > { %v3848_v42 = vpop.permute.xlu1 %1484  ;;  %v3850_v13 = vpop.permute.xlu0 %1519 }
 0x240   : > { %4430 = vst [vmem:[#allocation58_spill] sm:$0xff] %v3848_v42  ;;  %4431 = vst [vmem:[#allocation59_spill] sm:$0xff] %v3850_v13  ;;  %v1581_v42 = vadd.f32 %v1525_v23, %v1189_v53  ;;  %v1583_v53 = vadd.f32 %v1527_v20, %v1191_v45  ;;  %v1188_v45 = vld [vmem:[%s3845_s12 + $0x10] sm:$0xff] }
 0x243   : > { %v3855_v63 = vpop.permute.xlu1 %1494  ;;  %v1698_v52 = vpop.permute.xlu0 %1697 }
 0x244   : > { %v1971_v35 = vadd.f32 %v1698_v52, %v1579_v9  ;;  %v1522_v9 = vmul.f32 %v3700_v7, %v3278_v39  ;;  %v1531_v39 = vmul.f32 %v3708_v56, %v3324_v0  ;;  %v1195_v52 = vld [vmem:[%s3845_s12 + $0x48] sm:$0xff]  ;;  %v1533_v0 = vmul.f32 %v3714_v59, %v3336_v47 }
 0x246   : > { %v2027_v49 = vmax.f32 %v1971_v35, 0.0  ;;  %v1578_v31 = vadd.f32 %v1522_v9, %v1186_v58  ;;  %v1587_v2 = vadd.f32 %v1531_v39, %v1195_v52 }
 0x247   : > { %v3860_v43 = vpop.permute.xlu1 %1504  ;;  %v1708_v13 = vpop.permute.xlu0 %1707 }
 0x248   : > { %2083 = vst.msk [vmem:[%s3863_s15 + $0x8] sm:$0xff] %vm401_vm0, %v2027_v49  ;;  %v1973_v14 = vadd.f32 %v1708_v13, %v1581_v42  ;;  %v4432_v42 = vld [vmem:[#allocation8_spill] sm:$0xff] }
 0x249   : > { %v1524_v13 = vmul.f32 %v3692_v10, %v4432_v42  ;;  %v1526_v10 = vmul.f32 %v3702_v30, %v3304_v22  ;;  %v4433_v42 = vld [vmem:[#allocation9_spill] sm:$0xff] }
 0x24a   : > { %v2029_v16 = vmax.f32 %v1973_v14, 0.0  ;;  %v1528_v47 = vmul.f32 %v3712_v60, %v4433_v42 }
 0x24b   : > { %v3871_v34 = vpop.permute.xlu1 %1514  ;;  %v1718_v35 = vpop.permute.xlu0 %1717 }
 0x24c   : > { %2085 = vst.msk [vmem:[%s3863_s15 + $0x18] sm:$0xff] %vm401_vm0, %v2029_v16  ;;  %v1975_v49 = vadd.f32 %v1718_v35, %v1583_v53  ;;  %v1580_v53 = vadd.f32 %v1524_v13, %v1188_v45  ;;  %v1190_v35 = vld [vmem:[%s3845_s12 + $0x20] sm:$0xff]  ;;  %v1535_v13 = vmul.f32 %v3720_v18, %v3348_v8  ;;  %v1530_v8 = vmul.f32 %v3724_v6, %v3328_v54 }
 0x24d   : > { %v1582_v59 = vadd.f32 %v1526_v10, %v1190_v35  ;;  %v1539_v35 = vmul.f32 %v3732_v12, %v3372_v15  ;;  %v1534_v15 = vmul.f32 %v3736_v27, %v3351_v21 }
 0x24e   : > { %v2031_v7 = vmax.f32 %v1975_v49, 0.0  ;;  %v1197_v49 = vld [vmem:[%s3845_s12 + $0x58] sm:$0xff] }
 0x24f   : > { %v1693_v20 = vpop.permute.xlu1 %1692  ;;  %v1728_v23 = vpop.permute.xlu0 %1727 }
 0x250   : > { %2087 = vst.msk [vmem:[%s3863_s15 + $0x28] sm:$0xff] %vm401_vm0, %v2031_v7  ;;  %v1970_v14 = vadd.f32 %v1693_v20, %v1578_v31  ;;  %v1977_v16 = vadd.f32 %v1728_v23, %v1585_v50  ;;  %v1589_v31 = vadd.f32 %v1533_v0, %v1197_v49  ;;  %v1192_v50 = vld [vmem:[%s3845_s12 + $0x30] sm:$0xff]  ;;  %v1199_v23 = vld [vmem:[%s3845_s12 + $0x68] sm:$0xff]  ;;  %v1194_v0 = vld [vmem:[%s3845_s12 + $0x40] sm:$0xff] }
 0x251   : > { %v1584_v18 = vadd.f32 %v1528_v47, %v1192_v50  ;;  %v1203_v47 = vld [vmem:[%s3845_s12 + $0x88] sm:$0xff] }
 0x252   : > { %v2026_v56 = vmax.f32 %v1970_v14, 0.0  ;;  %v2033_v9 = vmax.f32 %v1977_v16, 0.0  ;;  %v1537_v14 = vmul.f32 %v3726_v55, %v3360_v62  ;;  %v1532_v62 = vmul.f32 %v3730_v3, %v3339_v17 }
 0x253   : > { %v1703_v58 = vpop.permute.xlu1 %1702  ;;  %v1738_v51 = vpop.permute.xlu0 %1737  ;;  %v1586_v55 = vadd.f32 %v1530_v8, %v1194_v0 }
 0x254   : > { %2082 = vst.msk [vmem:[%s3863_s15] sm:$0xff] %vm401_vm0, %v2026_v56  ;;  %2089 = vst.msk [vmem:[%s3863_s15 + $0x38] sm:$0xff] %vm401_vm0, %v2033_v9  ;;  %v1972_v22 = vadd.f32 %v1703_v58, %v1580_v53  ;;  %v1979_v30 = vadd.f32 %v1738_v51, %v1587_v2  ;;  %v1591_v53 = vadd.f32 %v1535_v13, %v1199_v23  ;;  %v1201_v2 = vld [vmem:[%s3845_s12 + $0x78] sm:$0xff] }
 0x255   : > { %v1593_v49 = vadd.f32 %v1537_v14, %v1201_v2  ;;  %v1543_v23 = vmul.f32 %v3744_v19, %v3396_v5  ;;  %v1538_v5 = vmul.f32 %v3748_v48, %v3375_v29  ;;  %v1202_v2 = vld [vmem:[%s3845_s12 + $0x80] sm:$0xff] }
 0x256   : > { %v2028_v39 = vmax.f32 %v1972_v22, 0.0  ;;  %v2035_v7 = vmax.f32 %v1979_v30, 0.0  ;;  %v1196_v22 = vld [vmem:[%s3845_s12 + $0x50] sm:$0xff] }
 0x257   : > { %v1713_v45 = vpop.permute.xlu1 %1712  ;;  %v1748_v20 = vpop.permute.xlu0 %1747  ;;  %v1588_v12 = vadd.f32 %v1532_v62, %v1196_v22  ;;  %v1209_v62 = vld [vmem:[%s3845_s12 + $0xb8] sm:$0xff] }
 0x258   : > { %2084 = vst.msk [vmem:[%s3863_s15 + $0x10] sm:$0xff] %vm401_vm0, %v2028_v39  ;;  %2091 = vst.msk [vmem:[%s3863_s15 + $0x48] sm:$0xff] %vm401_vm0, %v2035_v7  ;;  %v1974_v60 = vadd.f32 %v1713_v45, %v1582_v59  ;;  %v1981_v52 = vadd.f32 %v1748_v20, %v1589_v31  ;;  %v1541_v59 = vmul.f32 %v3738_v26, %v3384_v1  ;;  %v1198_v31 = vld [vmem:[%s3845_s12 + $0x60] sm:$0xff]  ;;  %v1205_v20 = vld [vmem:[%s3845_s12 + $0x98] sm:$0xff] }
 0x259   : > { %v1595_v7 = vadd.f32 %v1539_v35, %v1203_v47  ;;  %v1536_v1 = vmul.f32 %v3742_v46, %v3363_v25  ;;  %v1590_v26 = vadd.f32 %v1534_v15, %v1198_v31  ;;  %v1549_v47 = vmul.f32 %v3762_v61, %v3432_v36 }
 0x25a   : > { %v2030_v16 = vmax.f32 %v1974_v60, 0.0  ;;  %v2037_v10 = vmax.f32 %v1981_v52, 0.0  ;;  %v1597_v8 = vadd.f32 %v1541_v59, %v1205_v20  ;;  %v1544_v36 = vmul.f32 %v3766_v37, %v3411_v41  ;;  %v1208_v20 = vld [vmem:[%s3845_s12 + $0xb0] sm:$0xff] }
 0x25b   : > { %v1723_v56 = vpop.permute.xlu1 %1722  ;;  %v1758_v9 = vpop.permute.xlu0 %1757 }
 0x25c   : > { %2086 = vst.msk [vmem:[%s3863_s15 + $0x20] sm:$0xff] %vm401_vm0, %v2030_v16  ;;  %2093 = vst.msk [vmem:[%s3863_s15 + $0x58] sm:$0xff] %vm401_vm0, %v2037_v10  ;;  %v1976_v54 = vadd.f32 %v1723_v56, %v1584_v18  ;;  %v1983_v6 = vadd.f32 %v1758_v9, %v1591_v53  ;;  %v1200_v18 = vld [vmem:[%s3845_s12 + $0x70] sm:$0xff]  ;;  %v1207_v10 = vld [vmem:[%s3845_s12 + $0xa8] sm:$0xff]  ;;  %v1545_v53 = vmul.f32 %v3750_v11, %v3408_v28 }
 0x25d   : > { %v1592_v19 = vadd.f32 %v1536_v1, %v1200_v18  ;;  %v1599_v9 = vadd.f32 %v1543_v23, %v1207_v10  ;;  %v1540_v28 = vmul.f32 %v3754_v44, %v3387_v33  ;;  %v1594_v11 = vadd.f32 %v1538_v5, %v1202_v2  ;;  %v1215_v1 = vld [vmem:[%s3845_s12 + $0xe8] sm:$0xff]  ;;  %v4435_v23 = vld [vmem:[#allocation34_spill] sm:$0xff]  ;;  %v1210_v10 = vld [vmem:[%s3845_s12 + $0xc0] sm:$0xff] }
 0x25e   : > { %v2032_v58 = vmax.f32 %v1976_v54, 0.0  ;;  %v2039_v51 = vmax.f32 %v1983_v6, 0.0  ;;  %v1217_v5 = vld [vmem:[%s3845_s12 + $0xf8] sm:$0xff] }
 0x25f   : > { %v1733_v30 = vpop.permute.xlu1 %1732  ;;  %v1768_v42 = vpop.permute.xlu0 %1767 }
 0x260   : > { %2088 = vst.msk [vmem:[%s3863_s15 + $0x30] sm:$0xff] %vm401_vm0, %v2032_v58  ;;  %2095 = vst.msk [vmem:[%s3863_s15 + $0x68] sm:$0xff] %vm401_vm0, %v2039_v51  ;;  %v1978_v17 = vadd.f32 %v1733_v30, %v1586_v55  ;;  %v1985_v3 = vadd.f32 %v1768_v42, %v1593_v49  ;;  %v1547_v55 = vmul.f32 %v3756_v4, %v3420_v32  ;;  %v1204_v49 = vld [vmem:[%s3845_s12 + $0x90] sm:$0xff]  ;;  %v1211_v42 = vld [vmem:[%s3845_s12 + $0xc8] sm:$0xff] }
 0x261   : > { %v1601_v51 = vadd.f32 %v1545_v53, %v1209_v62  ;;  %v1542_v32 = vmul.f32 %v3760_v40, %v3399_v24  ;;  %v1596_v4 = vadd.f32 %v1540_v28, %v1204_v49 }
 0x262   : > { %v2034_v13 = vmax.f32 %v1978_v17, 0.0  ;;  %v2041_v39 = vmax.f32 %v1985_v3, 0.0  ;;  %v1603_v15 = vadd.f32 %v1547_v55, %v1211_v42 }
 0x263   : > { %v1743_v50 = vpop.permute.xlu1 %1742  ;;  %v1778_v45 = vpop.permute.xlu0 %1777 }
 0x264   : > { %2090 = vst.msk [vmem:[%s3863_s15 + $0x40] sm:$0xff] %vm401_vm0, %v2034_v13  ;;  %2097 = vst.msk [vmem:[%s3863_s15 + $0x78] sm:$0xff] %vm401_vm0, %v2041_v39  ;;  %v1980_v21 = vadd.f32 %v1743_v50, %v1588_v12  ;;  %v1987_v27 = vadd.f32 %v1778_v45, %v1595_v7  ;;  %v1206_v12 = vld [vmem:[%s3845_s12 + $0xa0] sm:$0xff]  ;;  %v1213_v39 = vld [vmem:[%s3845_s12 + $0xd8] sm:$0xff]  ;;  %v1551_v7 = vmul.f32 %v3768_v57, %v3444_v38 }
 0x265   : > { %v1598_v61 = vadd.f32 %v1542_v32, %v1206_v12  ;;  %v1605_v45 = vadd.f32 %v1549_v47, %v1213_v39  ;;  %v1600_v57 = vadd.f32 %v1544_v36, %v1208_v20  ;;  %v4445_v32 = vld [vmem:[#allocation39_spill] sm:$0xff]  ;;  %v4447_v36 = vld [vmem:[#allocation40_spill] sm:$0xff] }
 0x266   : > { %v2036_v60 = vmax.f32 %v1980_v21, 0.0  ;;  %v2043_v52 = vmax.f32 %v1987_v27, 0.0 }
 0x267   : > { %v1753_v14 = vpop.permute.xlu1 %1752  ;;  %v1788_v16 = vpop.permute.xlu0 %1787 }
 0x268   : > { %2092 = vst.msk [vmem:[%s3863_s15 + $0x50] sm:$0xff] %vm401_vm0, %v2036_v60  ;;  %2099 = vst.msk [vmem:[%s3863_s15 + $0x88] sm:$0xff] %vm401_vm0, %v2043_v52  ;;  %v1982_v25 = vadd.f32 %v1753_v14, %v1590_v26  ;;  %v1989_v46 = vadd.f32 %v1788_v16, %v1597_v8  ;;  %v4434_v26 = vld [vmem:[#allocation10_spill] sm:$0xff]  ;;  %v4436_v60 = vld [vmem:[#allocation13_spill] sm:$0xff]  ;;  %v1607_v16 = vadd.f32 %v1551_v7, %v1215_v1 }
 0x269   : > { %v1546_v38 = vmul.f32 %v4435_v23, %v4434_v26  ;;  %v4437_v52 = vld [vmem:[#allocation35_spill] sm:$0xff]  ;;  %v1216_v1 = vld [vmem:[%s3845_s12 + $0xf0] sm:$0xff]  ;;  %v1223_v26 = vld [vmem:[%s3845_s12 + $0x128] sm:$0xff] }
 0x26a   : > { %v2038_v0 = vmax.f32 %v1982_v25, 0.0  ;;  %v2045_v56 = vmax.f32 %v1989_v46, 0.0  ;;  %v1553_v8 = vmul.f32 %v4437_v52, %v4436_v60  ;;  %v4451_v60 = vld [vmem:[#allocation42_spill] sm:$0xff] }
 0x26b   : > { %v1763_v54 = vpop.permute.xlu1 %1762  ;;  %v1798_v6 = vpop.permute.xlu0 %1797  ;;  %v1602_v2 = vadd.f32 %v1546_v38, %v1210_v10 }
 0x26c   : > { %2094 = vst.msk [vmem:[%s3863_s15 + $0x60] sm:$0xff] %vm401_vm0, %v2038_v0  ;;  %2101 = vst.msk [vmem:[%s3863_s15 + $0x98] sm:$0xff] %vm401_vm0, %v2045_v56  ;;  %v1984_v29 = vadd.f32 %v1763_v54, %v1592_v19  ;;  %v1991_v48 = vadd.f32 %v1798_v6, %v1599_v9  ;;  %v4438_v0 = vld [vmem:[#allocation11_spill] sm:$0xff]  ;;  %v4439_v56 = vld [vmem:[#allocation36_spill] sm:$0xff]  ;;  %v1609_v28 = vadd.f32 %v1553_v8, %v1217_v5 }
 0x26d   : > { %v1548_v9 = vmul.f32 %v4439_v56, %v4438_v0  ;;  %v4440_v54 = vld [vmem:[#allocation15_spill] sm:$0xff]  ;;  %v4441_v6 = vld [vmem:[#allocation37_spill] sm:$0xff]  ;;  %v1225_v0 = vld [vmem:[%s3845_s12 + $0x138] sm:$0xff] }
 0x26e   : > { %v2040_v35 = vmax.f32 %v1984_v29, 0.0  ;;  %v2047_v58 = vmax.f32 %v1991_v48, 0.0  ;;  %v1555_v62 = vmul.f32 %v4441_v6, %v4440_v54  ;;  %v1218_v5 = vld [vmem:[%s3845_s12 + $0x100] sm:$0xff]  ;;  %v4455_v54 = vld [vmem:[#allocation44_spill] sm:$0xff] }
 0x26f   : > { %v1773_v22 = vpop.permute.xlu1 %1772  ;;  %v1808_v30 = vpop.permute.xlu0 %1807 }
 0x270   : > { %2096 = vst.msk [vmem:[%s3863_s15 + $0x70] sm:$0xff] %vm401_vm0, %v2040_v35  ;;  %2103 = vst.msk [vmem:[%s3863_s15 + $0xa8] sm:$0xff] %vm401_vm0, %v2047_v58  ;;  %v1986_v33 = vadd.f32 %v1773_v22, %v1594_v11  ;;  %v1993_v44 = vadd.f32 %v1808_v30, %v1601_v51  ;;  %v1212_v11 = vld [vmem:[%s3845_s12 + $0xd0] sm:$0xff]  ;;  %v1219_v58 = vld [vmem:[%s3845_s12 + $0x108] sm:$0xff] }
 0x271   : > { %v4442_v22 = vld [vmem:[#allocation12_spill] sm:$0xff]  ;;  %v4443_v30 = vld [vmem:[#allocation38_spill] sm:$0xff] }
 0x272   : > { %v2042_v17 = vmax.f32 %v1986_v33, 0.0  ;;  %v2049_v3 = vmax.f32 %v1993_v44, 0.0  ;;  %v1550_v42 = vmul.f32 %v4443_v30, %v4442_v22  ;;  %v1604_v33 = vadd.f32 %v1548_v9, %v1212_v11  ;;  %v4444_v44 = vld [vmem:[#allocation17_spill] sm:$0xff]  ;;  %v1227_v22 = vld [vmem:[%s3845_s12 + $0x148] sm:$0xff] }
 0x273   : > { %v1783_v59 = vpop.permute.xlu1 %1782  ;;  %v1818_v13 = vpop.permute.xlu0 %1817 }
 0x274   : > { %2098 = vst.msk [vmem:[%s3863_s15 + $0x80] sm:$0xff] %vm401_vm0, %v2042_v17  ;;  %2105 = vst.msk [vmem:[%s3863_s15 + $0xb8] sm:$0xff] %vm401_vm0, %v2049_v3  ;;  %v1988_v24 = vadd.f32 %v1783_v59, %v1596_v4  ;;  %v1995_v40 = vadd.f32 %v1818_v13, %v1603_v15  ;;  %v1557_v4 = vmul.f32 %v4445_v32, %v4444_v44  ;;  %v1214_v15 = vld [vmem:[%s3845_s12 + $0xe0] sm:$0xff]  ;;  %v1221_v13 = vld [vmem:[%s3845_s12 + $0x118] sm:$0xff] }
 0x275   : > { %v1611_v3 = vadd.f32 %v1555_v62, %v1219_v58  ;;  %v1606_v7 = vadd.f32 %v1550_v42, %v1214_v15  ;;  %v1220_v58 = vld [vmem:[%s3845_s12 + $0x110] sm:$0xff]  ;;  %v4459_v44 = vld [vmem:[#allocation46_spill] sm:$0xff] }
 0x276   : > { %v2044_v31 = vmax.f32 %v1988_v24, 0.0  ;;  %v2051_v50 = vmax.f32 %v1995_v40, 0.0  ;;  %v4446_v40 = vld [vmem:[#allocation14_spill] sm:$0xff] }
 0x277   : > { %v1793_v21 = vpop.permute.xlu1 %1792  ;;  %v1828_v27 = vpop.permute.xlu0 %1827 }
 0x278   : > { %2100 = vst.msk [vmem:[%s3863_s15 + $0x90] sm:$0xff] %vm401_vm0, %v2044_v31  ;;  %2107 = vst.msk [vmem:[%s3863_s15 + $0xc8] sm:$0xff] %vm401_vm0, %v2051_v50  ;;  %v1990_v41 = vadd.f32 %v1793_v21, %v1598_v61  ;;  %v1997_v37 = vadd.f32 %v1828_v27, %v1605_v45  ;;  %v1552_v61 = vmul.f32 %v4447_v36, %v4446_v40  ;;  %v4448_v31 = vld [vmem:[#allocation19_spill] sm:$0xff]  ;;  %v4449_v50 = vld [vmem:[#allocation41_spill] sm:$0xff] }
 0x279   : > { %v1559_v45 = vmul.f32 %v4449_v50, %v4448_v31  ;;  %v1613_v27 = vadd.f32 %v1557_v4, %v1221_v13  ;;  %v1222_v13 = vld [vmem:[%s3845_s12 + $0x120] sm:$0xff]  ;;  %v1229_v40 = vld [vmem:[%s3845_s12 + $0x158] sm:$0xff]  ;;  %v4463_v31 = vld [vmem:[#allocation48_spill] sm:$0xff] }
 0x27a   : > { %v2046_v18 = vmax.f32 %v1990_v41, 0.0  ;;  %v2053_v14 = vmax.f32 %v1997_v37, 0.0  ;;  %v1608_v8 = vadd.f32 %v1552_v61, %v1216_v1 }
 0x27b   : > { %v1803_v25 = vpop.permute.xlu1 %1802  ;;  %v1838_v46 = vpop.permute.xlu0 %1837 }
 0x27c   : > { %2102 = vst.msk [vmem:[%s3863_s15 + $0xa0] sm:$0xff] %vm401_vm0, %v2046_v18  ;;  %2109 = vst.msk [vmem:[%s3863_s15 + $0xd8] sm:$0xff] %vm401_vm0, %v2053_v14  ;;  %v1992_v19 = vadd.f32 %v1803_v25, %v1600_v57  ;;  %v1999_v53 = vadd.f32 %v1838_v46, %v1607_v16  ;;  %v4450_v57 = vld [vmem:[#allocation16_spill] sm:$0xff]  ;;  %v4452_v18 = vld [vmem:[#allocation21_spill] sm:$0xff]  ;;  %v1615_v46 = vadd.f32 %v1559_v45, %v1223_v26 }
 0x27d   : > { %v1554_v52 = vmul.f32 %v4451_v60, %v4450_v57  ;;  %v4453_v14 = vld [vmem:[#allocation43_spill] sm:$0xff]  ;;  %v1224_v26 = vld [vmem:[%s3845_s12 + $0x130] sm:$0xff]  ;;  %v1231_v57 = vld [vmem:[%s3845_s12 + $0x168] sm:$0xff] }
 0x27e   : > { %v2048_v29 = vmax.f32 %v1992_v19, 0.0  ;;  %v2055_v48 = vmax.f32 %v1999_v53, 0.0  ;;  %v1561_v16 = vmul.f32 %v4453_v14, %v4452_v18  ;;  %v4467_v18 = vld [vmem:[#allocation50_spill] sm:$0xff] }
 0x27f   : > { %v1813_v55 = vpop.permute.xlu1 %1812  ;;  %v1848_v35 = vpop.permute.xlu0 %1847  ;;  %v1610_v62 = vadd.f32 %v1554_v52, %v1218_v5 }
 0x280   : > { %2104 = vst.msk [vmem:[%s3863_s15 + $0xb0] sm:$0xff] %vm401_vm0, %v2048_v29  ;;  %2111 = vst.msk [vmem:[%s3863_s15 + $0xe8] sm:$0xff] %vm401_vm0, %v2055_v48  ;;  %v1994_v51 = vadd.f32 %v1813_v55, %v1602_v2  ;;  %v2001_v49 = vadd.f32 %v1848_v35, %v1609_v28  ;;  %v4454_v2 = vld [vmem:[#allocation18_spill] sm:$0xff]  ;;  %v4456_v29 = vld [vmem:[#allocation23_spill] sm:$0xff]  ;;  %v1617_v35 = vadd.f32 %v1561_v16, %v1225_v0 }
 0x281   : > { %v1556_v6 = vmul.f32 %v4455_v54, %v4454_v2  ;;  %v4457_v48 = vld [vmem:[#allocation45_spill] sm:$0xff]  ;;  %v1226_v0 = vld [vmem:[%s3845_s12 + $0x140] sm:$0xff]  ;;  %v1233_v2 = vld [vmem:[%s3845_s12 + $0x178] sm:$0xff] }
 0x282   : > { %v2050_v47 = vmax.f32 %v1994_v51, 0.0  ;;  %v2057_v17 = vmax.f32 %v2001_v49, 0.0  ;;  %v1563_v28 = vmul.f32 %v4457_v48, %v4456_v29  ;;  %v4471_v29 = vld [vmem:[#allocation52_spill] sm:$0xff] }
 0x283   : > { %v1823_v12 = vpop.permute.xlu1 %1822  ;;  %v1858_v59 = vpop.permute.xlu0 %1857  ;;  %v1612_v4 = vadd.f32 %v1556_v6, %v1220_v58 }
 0x284   : > { %2106 = vst.msk [vmem:[%s3863_s15 + $0xc0] sm:$0xff] %vm401_vm0, %v2050_v47  ;;  %2113 = vst.msk [vmem:[%s3863_s15 + $0xf8] sm:$0xff] %vm401_vm0, %v2057_v17  ;;  %v1996_v39 = vadd.f32 %v1823_v12, %v1604_v33  ;;  %v2003_v24 = vadd.f32 %v1858_v59, %v1611_v3  ;;  %v4458_v33 = vld [vmem:[#allocation20_spill] sm:$0xff]  ;;  %v4460_v47 = vld [vmem:[#allocation25_spill] sm:$0xff]  ;;  %v1619_v59 = vadd.f32 %v1563_v28, %v1227_v22 }
 0x285   : > { %v1558_v32 = vmul.f32 %v4459_v44, %v4458_v33  ;;  %v4461_v17 = vld [vmem:[#allocation47_spill] sm:$0xff]  ;;  %v1228_v22 = vld [vmem:[%s3845_s12 + $0x150] sm:$0xff]  ;;  %v1235_v33 = vld [vmem:[%s3845_s12 + $0x188] sm:$0xff] }
 0x286   : > { %v2052_v20 = vmax.f32 %v1996_v39, 0.0  ;;  %v2059_v21 = vmax.f32 %v2003_v24, 0.0  ;;  %v1565_v3 = vmul.f32 %v4461_v17, %v4460_v47  ;;  %v4475_v47 = vld [vmem:[#allocation54_spill] sm:$0xff] }
 0x287   : > { %v1833_v41 = vpop.permute.xlu1 %1832  ;;  %v1868_v37 = vpop.permute.xlu0 %1867  ;;  %v1614_v45 = vadd.f32 %v1558_v32, %v1222_v13 }
 0x288   : > { %2108 = vst.msk [vmem:[%s3863_s15 + $0xd0] sm:$0xff] %vm401_vm0, %v2052_v20  ;;  %2115 = vst.msk [vmem:[%s3863_s15 + $0x108] sm:$0xff] %vm401_vm0, %v2059_v21  ;;  %v1998_v23 = vadd.f32 %v1833_v41, %v1606_v7  ;;  %v2005_v38 = vadd.f32 %v1868_v37, %v1613_v27  ;;  %v4462_v7 = vld [vmem:[#allocation22_spill] sm:$0xff]  ;;  %v4464_v20 = vld [vmem:[#allocation27_spill] sm:$0xff]  ;;  %v1621_v37 = vadd.f32 %v1565_v3, %v1229_v40 }
 0x289   : > { %v1560_v50 = vmul.f32 %v4463_v31, %v4462_v7  ;;  %v4465_v21 = vld [vmem:[#allocation49_spill] sm:$0xff]  ;;  %v1230_v40 = vld [vmem:[%s3845_s12 + $0x160] sm:$0xff]  ;;  %v1237_v7 = vld [vmem:[%s3845_s12 + $0x198] sm:$0xff] }
 0x28a   : > { %v2054_v10 = vmax.f32 %v1998_v23, 0.0  ;;  %v2061_v25 = vmax.f32 %v2005_v38, 0.0  ;;  %v1567_v27 = vmul.f32 %v4465_v21, %v4464_v20  ;;  %v4479_v20 = vld [vmem:[#allocation56_spill] sm:$0xff] }
 0x28b   : > { %v1843_v19 = vpop.permute.xlu1 %1842  ;;  %v1878_v53 = vpop.permute.xlu0 %1877  ;;  %v1616_v16 = vadd.f32 %v1560_v50, %v1224_v26 }
 0x28c   : > { %2110 = vst.msk [vmem:[%s3863_s15 + $0xe0] sm:$0xff] %vm401_vm0, %v2054_v10  ;;  %2117 = vst.msk [vmem:[%s3863_s15 + $0x118] sm:$0xff] %vm401_vm0, %v2061_v25  ;;  %v2000_v56 = vadd.f32 %v1843_v19, %v1608_v8  ;;  %v2007_v9 = vadd.f32 %v1878_v53, %v1615_v46  ;;  %v4466_v8 = vld [vmem:[#allocation24_spill] sm:$0xff]  ;;  %v4468_v10 = vld [vmem:[#allocation29_spill] sm:$0xff]  ;;  %v1623_v53 = vadd.f32 %v1567_v27, %v1231_v57 }
 0x28d   : > { %v1562_v14 = vmul.f32 %v4467_v18, %v4466_v8  ;;  %v4469_v25 = vld [vmem:[#allocation51_spill] sm:$0xff]  ;;  %v1232_v57 = vld [vmem:[%s3845_s12 + $0x170] sm:$0xff]  ;;  %v1239_v8 = vld [vmem:[%s3845_s12 + $0x1a8] sm:$0xff] }
 0x28e   : > { %v2056_v11 = vmax.f32 %v2000_v56, 0.0  ;;  %v2063_v55 = vmax.f32 %v2007_v9, 0.0  ;;  %v1569_v46 = vmul.f32 %v4469_v25, %v4468_v10  ;;  %v4483_v10 = vld [vmem:[#allocation58_spill] sm:$0xff] }
 0x28f   : > { %v1853_v51 = vpop.permute.xlu1 %1852  ;;  %v1888_v49 = vpop.permute.xlu0 %1887  ;;  %v1618_v28 = vadd.f32 %v1562_v14, %v1226_v0 }
 0x290   : > { %2112 = vst.msk [vmem:[%s3863_s15 + $0xf0] sm:$0xff] %vm401_vm0, %v2056_v11  ;;  %2119 = vst.msk [vmem:[%s3863_s15 + $0x128] sm:$0xff] %vm401_vm0, %v2063_v55  ;;  %v2002_v30 = vadd.f32 %v1853_v51, %v1610_v62  ;;  %v2009_v42 = vadd.f32 %v1888_v49, %v1617_v35  ;;  %v4470_v62 = vld [vmem:[#allocation26_spill] sm:$0xff]  ;;  %v4472_v11 = vld [vmem:[#allocation31_spill] sm:$0xff]  ;;  %v1625_v49 = vadd.f32 %v1569_v46, %v1233_v2 }
 0x291   : > { %v1564_v48 = vmul.f32 %v4471_v29, %v4470_v62  ;;  %v4473_v55 = vld [vmem:[#allocation53_spill] sm:$0xff]  ;;  %v1234_v2 = vld [vmem:[%s3845_s12 + $0x180] sm:$0xff]  ;;  %v1241_v62 = vld [vmem:[%s3845_s12 + $0x1b8] sm:$0xff] }
 0x292   : > { %v2058_v15 = vmax.f32 %v2002_v30, 0.0  ;;  %v2065_v12 = vmax.f32 %v2009_v42, 0.0  ;;  %v1571_v35 = vmul.f32 %v4473_v55, %v4472_v11  ;;  %v4486_v11 = vld [vmem:[#allocation4_spill] sm:$0xff] }
 0x293   : > { %v1863_v39 = vpop.permute.xlu1 %1862  ;;  %v1898_v24 = vpop.permute.xlu0 %1897  ;;  %v1620_v3 = vadd.f32 %v1564_v48, %v1228_v22  ;;  %v1572_v55 = vmul.f32 %v3855_v63, %v4486_v11 }
 0x294   : > { %2114 = vst.msk [vmem:[%s3863_s15 + $0x100] sm:$0xff] %vm401_vm0, %v2058_v15  ;;  %2121 = vst.msk [vmem:[%s3863_s15 + $0x138] sm:$0xff] %vm401_vm0, %v2065_v12  ;;  %v2004_v36 = vadd.f32 %v1863_v39, %v1612_v4  ;;  %v2011_v61 = vadd.f32 %v1898_v24, %v1619_v59  ;;  %v4474_v4 = vld [vmem:[#allocation28_spill] sm:$0xff]  ;;  %v4476_v15 = vld [vmem:[#allocation3_spill] sm:$0xff]  ;;  %v1627_v24 = vadd.f32 %v1571_v35, %v1235_v33 }
 0x295   : > { %v1566_v17 = vmul.f32 %v4475_v47, %v4474_v4  ;;  %v4477_v12 = vld [vmem:[#allocation55_spill] sm:$0xff] }
 0x296   : > { %v2060_v1 = vmax.f32 %v2004_v36, 0.0  ;;  %v2067_v41 = vmax.f32 %v2011_v61, 0.0  ;;  %v1573_v59 = vmul.f32 %v4477_v12, %v4476_v15  ;;  %v4488_v12 = vld [vmem:[#allocation33_spill] sm:$0xff] }
 0x297   : > { %v1873_v23 = vpop.permute.xlu1 %1872  ;;  %v1908_v38 = vpop.permute.xlu0 %1907  ;;  %v1622_v27 = vadd.f32 %v1566_v17, %v1230_v40  ;;  %v1240_v40 = vld [vmem:[%s3845_s12 + $0x1b0] sm:$0xff] }
 0x298   : > { %2116 = vst.msk [vmem:[%s3863_s15 + $0x110] sm:$0xff] %vm401_vm0, %v2060_v1  ;;  %2123 = vst.msk [vmem:[%s3863_s15 + $0x148] sm:$0xff] %vm401_vm0, %v2067_v41  ;;  %v2006_v60 = vadd.f32 %v1873_v23, %v1614_v45  ;;  %v2013_v52 = vadd.f32 %v1908_v38, %v1621_v37  ;;  %v4478_v45 = vld [vmem:[#allocation30_spill] sm:$0xff]  ;;  %v4480_v1 = vld [vmem:[#allocation5_spill] sm:$0xff]  ;;  %v1629_v38 = vadd.f32 %v1573_v59, %v1237_v7 }
 0x299   : > { %v1568_v21 = vmul.f32 %v4479_v20, %v4478_v45  ;;  %v4481_v41 = vld [vmem:[#allocation57_spill] sm:$0xff]  ;;  %v1576_v59 = vmul.f32 %v3871_v34, %v4488_v12 }
 0x29a   : > { %v2062_v5 = vmax.f32 %v2006_v60, 0.0  ;;  %v2069_v19 = vmax.f32 %v2013_v52, 0.0  ;;  %v1575_v37 = vmul.f32 %v4481_v41, %v4480_v1 }
 0x29b   : > { %v1883_v56 = vpop.permute.xlu1 %1882  ;;  %v1918_v9 = vpop.permute.xlu0 %1917  ;;  %v1624_v46 = vadd.f32 %v1568_v21, %v1232_v57 }
 0x29c   : > { %2118 = vst.msk [vmem:[%s3863_s15 + $0x120] sm:$0xff] %vm401_vm0, %v2062_v5  ;;  %2125 = vst.msk [vmem:[%s3863_s15 + $0x158] sm:$0xff] %vm401_vm0, %v2069_v19  ;;  %v2008_v54 = vadd.f32 %v1883_v56, %v1616_v16  ;;  %v2015_v6 = vadd.f32 %v1918_v9, %v1623_v53  ;;  %v4482_v16 = vld [vmem:[#allocation32_spill] sm:$0xff]  ;;  %v4484_v5 = vld [vmem:[#allocation7_spill] sm:$0xff]  ;;  %v1631_v9 = vadd.f32 %v1575_v37, %v1239_v8 }
 0x29d   : > { %v1570_v25 = vmul.f32 %v4483_v10, %v4482_v16  ;;  %v4485_v19 = vld [vmem:[#allocation59_spill] sm:$0xff] }
 0x29e   : > { %v2064_v58 = vmax.f32 %v2008_v54, 0.0  ;;  %v2071_v51 = vmax.f32 %v2015_v6, 0.0  ;;  %v1577_v53 = vmul.f32 %v4485_v19, %v4484_v5 }
 0x29f   : > { %v1893_v30 = vpop.permute.xlu1 %1892  ;;  %v1928_v42 = vpop.permute.xlu0 %1927 }
 0x2a0   : > { %2120 = vst.msk [vmem:[%s3863_s15 + $0x130] sm:$0xff] %vm401_vm0, %v2064_v58  ;;  %2127 = vst.msk [vmem:[%s3863_s15 + $0x168] sm:$0xff] %vm401_vm0, %v2071_v51  ;;  %v2010_v44 = vadd.f32 %v1893_v30, %v1618_v28  ;;  %v2017_v32 = vadd.f32 %v1928_v42, %v1625_v49  ;;  %v1626_v28 = vadd.f32 %v1570_v25, %v1234_v2  ;;  %v1236_v30 = vld [vmem:[%s3845_s12 + $0x190] sm:$0xff] }
 0x2a1   : > { %v1633_v51 = vadd.f32 %v1577_v53, %v1241_v62  ;;  %v1628_v47 = vadd.f32 %v1572_v55, %v1236_v30 }
 0x2a2   : > { %v2066_v13 = vmax.f32 %v2010_v44, 0.0  ;;  %v2073_v39 = vmax.f32 %v2017_v32, 0.0  ;;  %v4487_v44 = vld [vmem:[#allocation6_spill] sm:$0xff] }
 0x2a3   : > { %v1903_v36 = vpop.permute.xlu1 %1902  ;;  %v1938_v61 = vpop.permute.xlu0 %1937  ;;  %v1574_v63 = vmul.f32 %v3860_v43, %v4487_v44 }
 0x2a4   : > { %2122 = vst.msk [vmem:[%s3863_s15 + $0x140] sm:$0xff] %vm401_vm0, %v2066_v13  ;;  %2129 = vst.msk [vmem:[%s3863_s15 + $0x178] sm:$0xff] %vm401_vm0, %v2073_v39  ;;  %v2012_v31 = vadd.f32 %v1903_v36, %v1620_v3  ;;  %v2019_v50 = vadd.f32 %v1938_v61, %v1627_v24  ;;  %v1238_v3 = vld [vmem:[%s3845_s12 + $0x1a0] sm:$0xff]  ;;  %v1632_v61 = vadd.f32 %v1576_v59, %v1240_v40 }
 0x2a5   : > { %v1630_v39 = vadd.f32 %v1574_v63, %v1238_v3 }
 0x2a6   : > { %v2068_v26 = vmax.f32 %v2012_v31, 0.0  ;;  %v2075_v23 = vmax.f32 %v2019_v50, 0.0 }
 0x2a7   : > { %v1913_v60 = vpop.permute.xlu1 %1912  ;;  %v1948_v52 = vpop.permute.xlu0 %1947 }
 0x2a8   : > { %2124 = vst.msk [vmem:[%s3863_s15 + $0x150] sm:$0xff] %vm401_vm0, %v2068_v26  ;;  %2131 = vst.msk [vmem:[%s3863_s15 + $0x188] sm:$0xff] %vm401_vm0, %v2075_v23  ;;  %v2014_v18 = vadd.f32 %v1913_v60, %v1622_v27  ;;  %v2021_v14 = vadd.f32 %v1948_v52, %v1629_v38 }
 0x2aa   : > { %v2070_v0 = vmax.f32 %v2014_v18, 0.0  ;;  %v2077_v56 = vmax.f32 %v2021_v14, 0.0 }
 0x2ab   : > { %v1923_v54 = vpop.permute.xlu1 %1922  ;;  %v1958_v6 = vpop.permute.xlu0 %1957 }
 0x2ac   : > { %2126 = vst.msk [vmem:[%s3863_s15 + $0x160] sm:$0xff] %vm401_vm0, %v2070_v0  ;;  %2133 = vst.msk [vmem:[%s3863_s15 + $0x198] sm:$0xff] %vm401_vm0, %v2077_v56  ;;  %v2016_v29 = vadd.f32 %v1923_v54, %v1624_v46  ;;  %v2023_v48 = vadd.f32 %v1958_v6, %v1631_v9 }
 0x2ae   : > { %v2072_v35 = vmax.f32 %v2016_v29, 0.0  ;;  %v2079_v58 = vmax.f32 %v2023_v48, 0.0 }
 0x2af   : > { %v1933_v49 = vpop.permute.xlu1 %1932  ;;  %v1968_v22 = vpop.permute.xlu0 %1967 }
 0x2b0   : > { %2128 = vst.msk [vmem:[%s3863_s15 + $0x170] sm:$0xff] %vm401_vm0, %v2072_v35  ;;  %2135 = vst.msk [vmem:[%s3863_s15 + $0x1a8] sm:$0xff] %vm401_vm0, %v2079_v58  ;;  %v2018_v42 = vadd.f32 %v1933_v49, %v1626_v28  ;;  %v2025_v33 = vadd.f32 %v1968_v22, %v1633_v51 }
 0x2b2   : > { %v2074_v32 = vmax.f32 %v2018_v42, 0.0  ;;  %v2081_v4 = vmax.f32 %v2025_v33, 0.0 }
 0x2b3   : > { %v1943_v17 = vpop.permute.xlu1 %1942 }
 0x2b4   : > { %2130 = vst.msk [vmem:[%s3863_s15 + $0x180] sm:$0xff] %vm401_vm0, %v2074_v32  ;;  %2137 = vst.msk [vmem:[%s3863_s15 + $0x1b8] sm:$0xff] %vm401_vm0, %v2081_v4  ;;  %v2020_v15 = vadd.f32 %v1943_v17, %v1628_v47 }
 0x2b6   : > { %v2076_v13 = vmax.f32 %v2020_v15, 0.0 }
 0x2b7   : > { %v1953_v24 = vpop.permute.xlu1 %1952 }
 0x2b8   : > { %2132 = vst.msk [vmem:[%s3863_s15 + $0x190] sm:$0xff] %vm401_vm0, %v2076_v13  ;;  %v2022_v43 = vadd.f32 %v1953_v24, %v1630_v39 }
 0x2ba   : > { %v2078_v36 = vmax.f32 %v2022_v43, 0.0  ;;  %2144 = sbr.rel (!%p2980_p4) target bundleno = 785 (0x311), region = 40 }
 0x2bb   : > { %v1963_v7 = vpop.permute.xlu1 %1962 }
 0x2bc   : > { %2134 = vst.msk [vmem:[%s3863_s15 + $0x1a0] sm:$0xff] %vm401_vm0, %v2078_v36  ;;  %v2024_v31 = vadd.f32 %v1963_v7, %v1632_v61 }
 0x2be   : > { %v2080_v50 = vmax.f32 %v2024_v31, 0.0 }
 0x2c0   : > { %2136 = vst.msk [vmem:[%s3863_s15 + $0x1b0] sm:$0xff] %vm401_vm0, %v2080_v50 }
 0x2c1   : > { %s4498_s17 = smov (!%p2147_p8, %s2146_s17), 56 }
 0x2c2   : > { %s2619_s27 = sshll.u32 %s4498_s17, 7 }
 0x2c3   : > { %p2622_p9 = scmp.eq.s32.totalorder %s2619_s27, 0 }
 0x2c4   : > { %2837 = sdivrem.u32 (!%p2622_p9), %s4498_s17, 56 }
 0x2c5   : > { %2155 = sbr.rel (%p2622_p9) target bundleno = 785 (0x311), region = 44 }
 0x2cd   : > { %s4151_s23 = spop.drf %2837 }
 0x2ce   : > { %p2623_p10 = scmp.le.s32.totalorder %s4151_s23, 0 }
 0x2cf   : > { %s4489_s18 = smov (!%p2623_p10), %s4145_s26  ;;  %s4490_s24 = smov (!%p2623_p10), %s3863_s15 }
 0x2d0   : > { %2549 = sbr.rel (%p2623_p10) target bundleno = 756 (0x2f4), region = 129  ;;  %s4160_s28 = smov (!%p2623_p10), 0  }
 0x2d1   : > { %s4162_s29 = smov (!%p2623_p10), 0  }
 0x2d7 LB: >> { %v2329_v34 = vld [vmem:[%s2903_s24] sm:$0xff]  ;;  %v2331_v45 = vld [vmem:[%s2903_s24 + $0x8] sm:$0xff]  ;;  %v2333_v20 = vld [vmem:[%s2903_s24 + $0x10] sm:$0xff]  ;;  %s2441_s30 = sadd.s32 1, %s2907_s28  ;;  %s2323_s29 = sadd.s32 1, %s2911_s29   ;;  %s2911_s29 = sphi %s4162_s29, %s2323_s29   ;;  %s2907_s28 = sphi %s4160_s28, %s4493_s28   ;;  %s2903_s24 = sphi %s4490_s24, %s4492_s24   ;;  %s2899_s18 = sphi %s4489_s18, %s4491_s18  }
 0x2d8   : >> { %2330 = vst [vmem:[%s2899_s18] sm:$0xff] %v2329_v34  ;;  %2332 = vst [vmem:[%s2899_s18 + $0x8] sm:$0xff] %v2331_v45  ;;  %v2335_v21 = vld [vmem:[%s2903_s24 + $0x18] sm:$0xff]  ;;  %v2337_v27 = vld [vmem:[%s2903_s24 + $0x20] sm:$0xff]  ;;  %p2442_p11 = scmp.ge.s32.totalorder %s2441_s30, %s4151_s23  ;;  %p2322_p12 = scmp.ge.s32.totalorder %s2323_s29, %s4151_s23 }
 0x2d9   : >> { %2334 = vst [vmem:[%s2899_s18 + $0x10] sm:$0xff] %v2333_v20  ;;  %v2339_v1 = vld [vmem:[%s2903_s24 + $0x28] sm:$0xff]  ;;  %2336 = vst [vmem:[%s2899_s18 + $0x18] sm:$0xff] %v2335_v21  ;;  %v2341_v41 = vld [vmem:[%s2903_s24 + $0x30] sm:$0xff] }
 0x2da   : >> { %2338 = vst [vmem:[%s2899_s18 + $0x20] sm:$0xff] %v2337_v27  ;;  %2340 = vst [vmem:[%s2899_s18 + $0x28] sm:$0xff] %v2339_v1  ;;  %v2343_v37 = vld [vmem:[%s2903_s24 + $0x38] sm:$0xff]  ;;  %v2345_v26 = vld [vmem:[%s2903_s24 + $0x40] sm:$0xff]  ;;  %s4500_s30 = smov (%p2442_p11, %s2441_s30), 0 }
 0x2db   : >> { %2342 = vst [vmem:[%s2899_s18 + $0x30] sm:$0xff] %v2341_v41  ;;  %2344 = vst [vmem:[%s2899_s18 + $0x38] sm:$0xff] %v2343_v37  ;;  %v2347_v23 = vld [vmem:[%s2903_s24 + $0x48] sm:$0xff]  ;;  %v2349_v38 = vld [vmem:[%s2903_s24 + $0x50] sm:$0xff]  ;;  %s2444_s5 = smul.u32 448, %s4500_s30  ;;  %s4493_s28 = smov %s4500_s30 }
 0x2dc   : >> { %2346 = vst [vmem:[%s2899_s18 + $0x40] sm:$0xff] %v2345_v26  ;;  %v2351_v57 = vld [vmem:[%s2903_s24 + $0x58] sm:$0xff]  ;;  %2348 = vst [vmem:[%s2899_s18 + $0x48] sm:$0xff] %v2347_v23  ;;  %v2353_v60 = vld [vmem:[%s2903_s24 + $0x60] sm:$0xff] }
 0x2dd   : >> { %2350 = vst [vmem:[%s2899_s18 + $0x50] sm:$0xff] %v2349_v38  ;;  %2352 = vst [vmem:[%s2899_s18 + $0x58] sm:$0xff] %v2351_v57  ;;  %v2355_v52 = vld [vmem:[%s2903_s24 + $0x68] sm:$0xff]  ;;  %v2357_v8 = vld [vmem:[%s2903_s24 + $0x70] sm:$0xff]  ;;  %s4224_s6 = scalar_lea.vmem %s3863_s15, %s2444_s5 [#allocation2]   ;;  %s4227_s7 = scalar_lea.vmem %s4145_s26, %s2444_s5  }
 0x2de   : >> { %2354 = vst [vmem:[%s2899_s18 + $0x60] sm:$0xff] %v2353_v60  ;;  %2356 = vst [vmem:[%s2899_s18 + $0x68] sm:$0xff] %v2355_v52  ;;  %v2359_v18 = vld [vmem:[%s2903_s24 + $0x78] sm:$0xff]  ;;  %v2361_v14 = vld [vmem:[%s2903_s24 + $0x80] sm:$0xff] }
 0x2df   : >> { %2358 = vst [vmem:[%s2899_s18 + $0x70] sm:$0xff] %v2357_v8  ;;  %v2363_v16 = vld [vmem:[%s2903_s24 + $0x88] sm:$0xff]  ;;  %2360 = vst [vmem:[%s2899_s18 + $0x78] sm:$0xff] %v2359_v18  ;;  %v2365_v10 = vld [vmem:[%s2903_s24 + $0x90] sm:$0xff] }
 0x2e0   : >> { %2362 = vst [vmem:[%s2899_s18 + $0x80] sm:$0xff] %v2361_v14  ;;  %2364 = vst [vmem:[%s2899_s18 + $0x88] sm:$0xff] %v2363_v16  ;;  %v2367_v25 = vld [vmem:[%s2903_s24 + $0x98] sm:$0xff]  ;;  %v2369_v46 = vld [vmem:[%s2903_s24 + $0xa0] sm:$0xff] }
 0x2e1   : >> { %2366 = vst [vmem:[%s2899_s18 + $0x90] sm:$0xff] %v2365_v10  ;;  %2368 = vst [vmem:[%s2899_s18 + $0x98] sm:$0xff] %v2367_v25  ;;  %v2371_v5 = vld [vmem:[%s2903_s24 + $0xa8] sm:$0xff]  ;;  %v2373_v19 = vld [vmem:[%s2903_s24 + $0xb0] sm:$0xff] }
 0x2e2   : >> { %2370 = vst [vmem:[%s2899_s18 + $0xa0] sm:$0xff] %v2369_v46  ;;  %v2375_v53 = vld [vmem:[%s2903_s24 + $0xb8] sm:$0xff]  ;;  %2372 = vst [vmem:[%s2899_s18 + $0xa8] sm:$0xff] %v2371_v5  ;;  %v2377_v0 = vld [vmem:[%s2903_s24 + $0xc0] sm:$0xff] }
 0x2e3   : >> { %2374 = vst [vmem:[%s2899_s18 + $0xb0] sm:$0xff] %v2373_v19  ;;  %2376 = vst [vmem:[%s2899_s18 + $0xb8] sm:$0xff] %v2375_v53  ;;  %v2379_v56 = vld [vmem:[%s2903_s24 + $0xc8] sm:$0xff]  ;;  %v2381_v9 = vld [vmem:[%s2903_s24 + $0xd0] sm:$0xff] }
 0x2e4   : >> { %2378 = vst [vmem:[%s2899_s18 + $0xc0] sm:$0xff] %v2377_v0  ;;  %2380 = vst [vmem:[%s2899_s18 + $0xc8] sm:$0xff] %v2379_v56  ;;  %v2383_v2 = vld [vmem:[%s2903_s24 + $0xd8] sm:$0xff]  ;;  %v2385_v54 = vld [vmem:[%s2903_s24 + $0xe0] sm:$0xff] }
 0x2e5   : >> { %2382 = vst [vmem:[%s2899_s18 + $0xd0] sm:$0xff] %v2381_v9  ;;  %v2387_v6 = vld [vmem:[%s2903_s24 + $0xe8] sm:$0xff]  ;;  %2384 = vst [vmem:[%s2899_s18 + $0xd8] sm:$0xff] %v2383_v2  ;;  %v2389_v62 = vld [vmem:[%s2903_s24 + $0xf0] sm:$0xff] }
 0x2e6   : >> { %2386 = vst [vmem:[%s2899_s18 + $0xe0] sm:$0xff] %v2385_v54  ;;  %2388 = vst [vmem:[%s2899_s18 + $0xe8] sm:$0xff] %v2387_v6  ;;  %v2391_v29 = vld [vmem:[%s2903_s24 + $0xf8] sm:$0xff]  ;;  %v2393_v48 = vld [vmem:[%s2903_s24 + $0x100] sm:$0xff] }
 0x2e7   : >> { %2390 = vst [vmem:[%s2899_s18 + $0xf0] sm:$0xff] %v2389_v62  ;;  %2392 = vst [vmem:[%s2899_s18 + $0xf8] sm:$0xff] %v2391_v29  ;;  %v2395_v28 = vld [vmem:[%s2903_s24 + $0x108] sm:$0xff]  ;;  %v2397_v11 = vld [vmem:[%s2903_s24 + $0x110] sm:$0xff] }
 0x2e8   : >> { %2394 = vst [vmem:[%s2899_s18 + $0x100] sm:$0xff] %v2393_v48  ;;  %v2399_v55 = vld [vmem:[%s2903_s24 + $0x118] sm:$0xff]  ;;  %2396 = vst [vmem:[%s2899_s18 + $0x108] sm:$0xff] %v2395_v28  ;;  %v2401_v35 = vld [vmem:[%s2903_s24 + $0x120] sm:$0xff] }
 0x2e9   : >> { %2398 = vst [vmem:[%s2899_s18 + $0x110] sm:$0xff] %v2397_v11  ;;  %2400 = vst [vmem:[%s2899_s18 + $0x118] sm:$0xff] %v2399_v55  ;;  %v2403_v58 = vld [vmem:[%s2903_s24 + $0x128] sm:$0xff]  ;;  %v2405_v51 = vld [vmem:[%s2903_s24 + $0x130] sm:$0xff] }
 0x2ea   : >> { %2402 = vst [vmem:[%s2899_s18 + $0x120] sm:$0xff] %v2401_v35  ;;  %2404 = vst [vmem:[%s2899_s18 + $0x128] sm:$0xff] %v2403_v58  ;;  %v2407_v49 = vld [vmem:[%s2903_s24 + $0x138] sm:$0xff]  ;;  %v2409_v22 = vld [vmem:[%s2903_s24 + $0x140] sm:$0xff] }
 0x2eb   : >> { %2406 = vst [vmem:[%s2899_s18 + $0x130] sm:$0xff] %v2405_v51  ;;  %v2411_v30 = vld [vmem:[%s2903_s24 + $0x148] sm:$0xff]  ;;  %2408 = vst [vmem:[%s2899_s18 + $0x138] sm:$0xff] %v2407_v49  ;;  %v2413_v42 = vld [vmem:[%s2903_s24 + $0x150] sm:$0xff] }
 0x2ec   : >> { %2410 = vst [vmem:[%s2899_s18 + $0x140] sm:$0xff] %v2409_v22  ;;  %2412 = vst [vmem:[%s2899_s18 + $0x148] sm:$0xff] %v2411_v30  ;;  %v2415_v33 = vld [vmem:[%s2903_s24 + $0x158] sm:$0xff]  ;;  %v2417_v44 = vld [vmem:[%s2903_s24 + $0x160] sm:$0xff] }
 0x2ed   : >> { %2414 = vst [vmem:[%s2899_s18 + $0x150] sm:$0xff] %v2413_v42  ;;  %2416 = vst [vmem:[%s2899_s18 + $0x158] sm:$0xff] %v2415_v33  ;;  %v2419_v63 = vld [vmem:[%s2903_s24 + $0x168] sm:$0xff]  ;;  %v2421_v32 = vld [vmem:[%s2903_s24 + $0x170] sm:$0xff]  ;;  %2325 = sbr.rel (!%p2322_p12) target bundleno = 727 (0x2d7), region = 135 }
 0x2ee   : >> { %2418 = vst [vmem:[%s2899_s18 + $0x160] sm:$0xff] %v2417_v44  ;;  %v2423_v4 = vld [vmem:[%s2903_s24 + $0x178] sm:$0xff]  ;;  %2420 = vst [vmem:[%s2899_s18 + $0x168] sm:$0xff] %v2419_v63  ;;  %v2425_v47 = vld [vmem:[%s2903_s24 + $0x180] sm:$0xff] }
 0x2ef   : >> { %2422 = vst [vmem:[%s2899_s18 + $0x170] sm:$0xff] %v2421_v32  ;;  %2424 = vst [vmem:[%s2899_s18 + $0x178] sm:$0xff] %v2423_v4  ;;  %v2427_v17 = vld [vmem:[%s2903_s24 + $0x188] sm:$0xff]  ;;  %v2429_v3 = vld [vmem:[%s2903_s24 + $0x190] sm:$0xff] }
 0x2f0   : >> { %2426 = vst [vmem:[%s2899_s18 + $0x180] sm:$0xff] %v2425_v47  ;;  %2428 = vst [vmem:[%s2899_s18 + $0x188] sm:$0xff] %v2427_v17  ;;  %v2431_v15 = vld [vmem:[%s2903_s24 + $0x198] sm:$0xff]  ;;  %v2433_v12 = vld [vmem:[%s2903_s24 + $0x1a0] sm:$0xff] }
 0x2f1   : >> { %2430 = vst [vmem:[%s2899_s18 + $0x190] sm:$0xff] %v2429_v3  ;;  %v2435_v59 = vld [vmem:[%s2903_s24 + $0x1a8] sm:$0xff]  ;;  %2432 = vst [vmem:[%s2899_s18 + $0x198] sm:$0xff] %v2431_v15  ;;  %v2437_v13 = vld [vmem:[%s2903_s24 + $0x1b0] sm:$0xff] }
 0x2f2   : >> { %2434 = vst [vmem:[%s2899_s18 + $0x1a0] sm:$0xff] %v2433_v12  ;;  %2436 = vst [vmem:[%s2899_s18 + $0x1a8] sm:$0xff] %v2435_v59  ;;  %v2439_v39 = vld [vmem:[%s2903_s24 + $0x1b8] sm:$0xff]  ;;  %s4492_s24 = smov %s4224_s6 }
 0x2f3   : >> { %2438 = vst [vmem:[%s2899_s18 + $0x1b0] sm:$0xff] %v2437_v13  ;;  %2440 = vst [vmem:[%s2899_s18 + $0x1b8] sm:$0xff] %v2439_v39  ;;  %s4491_s18 = smov %s4227_s7 }
 0x2f4 PF: > { %2839 = sdivrem.u32 %s4498_s17, 56 }
 0x2f5   : > { %s2624_s8 = smul.u32 448, %s4151_s23 }
 0x2f7   : > { %s2452_s9 = scalar_lea.vmem %s3863_s15, %s2624_s8 [#allocation2]   ;;  %s2454_s10 = scalar_lea.vmem %s4145_s26, %s2624_s8  }
 0x2fd   : > { %s2840_s11 = spop.drf %2839 }
 0x2fe   : > { %p2626_p13 = scmp.le.s32.totalorder %s2840_s11, 0 }
 0x2ff   : > { %s2913_s12 = smov (!%p2626_p13), %s2454_s10   ;;  %s2917_s13 = smov (!%p2626_p13), %s2452_s9  }
 0x300   : > { %2563 = sbr.rel (%p2626_p13) target bundleno = 785 (0x311), region = 140  ;;  %s2921_s14 = smov (!%p2626_p13), 0  }
 0x301   : > { %s2925_s20 = smov (!%p2626_p13), 0  }
 0x307 LB: >> { %v2464_v24 = vld [vmem:[%s2919_s13] sm:$0xff]  ;;  %s2466_s21 = sadd.s32 1, %s2923_s14  ;;  %s2458_s20 = sadd.s32 1, %s2927_s20   ;;  %s2927_s20 = sphi %s2925_s20, %s2458_s20   ;;  %s2923_s14 = sphi %s2921_s14, %s2922_s14   ;;  %s2919_s13 = sphi %s2917_s13, %s2471_s13   ;;  %s2915_s12 = sphi %s2913_s12, %s2472_s12  }
 0x308   : >> { %2465 = vst [vmem:[%s2915_s12] sm:$0xff] %v2464_v24  ;;  %p2467_p0 = scmp.ge.s32.totalorder %s2466_s21, %s2840_s11  ;;  %p2457_p1 = scmp.ge.s32.totalorder %s2458_s20, %s2840_s11 }
 0x30a   : >> { %s4502_s21 = smov (%p2467_p0, %s2466_s21), 0  ;;  %2460 = sbr.rel (!%p2457_p1) target bundleno = 775 (0x307), region = 146 }
 0x30b   : >> { %s2627_s15 = sshll.u32 %s4502_s21, 3  ;;  %s2922_s14 = smov %s4502_s21  }
 0x30c   : >> { %s2471_s13 = scalar_lea.vmem %s2452_s9, %s2627_s15 [#allocation2]   ;;  %s2472_s12 = scalar_lea.vmem %s2454_s10, %s2627_s15  }
 0x311 PF: > { %p11_p2 = scmp.ge.s32.totalorder %s2970_s19, 4   ;;  %s4494_s15 = smov %s2891_s16 }
 0x312   : > { %s4495_s16 = smov %s2978_s22  ;;  %s4496_s17 = smov %s2970_s19 }
 0x313   :  { %13 = sbr.rel (!%p11_p2) target bundleno = 2 (0x2), region = 157 }

</bundles_post_ra>
